<compile_context>
chip_gen: v7x
topology: tpu7x:2x2x1
jax: 0.10.0
libtpu: 0.0.40
codegen_flags: <defaults>
</compile_context>

<pallas_src>
import functools

import jax
import jax.numpy as jnp
from jax.experimental import pallas as pl
from jax.experimental.pallas import tpu as pltpu


# ---------------------------------------------------------------------------
# Fused kernel: conv1+BN+ReLU -> conv2+BN+ReLU -> polyphase deconv+BN+ReLU
# ---------------------------------------------------------------------------
def _fused_upsample_kernel(x_ref, w1_ref, s1_ref, b1_ref,
                           w2_ref, s2_ref, b2_ref,
                           wd_ref, s3_ref, b3_ref,
                           o_ref, p1, p2, p3, *, H, W, base):
    HW = H * W
    # lane -> column index (n = lane % W); masks kill W-boundary wrap-around reads
    col = jax.lax.broadcasted_iota(jnp.int32, (1, HW), 1) % W
    mask_l = col != 0          # lanes where a (dx = -1) tap is valid
    mask_r = col != (W - 1)    # lanes where a (dx = +1) tap is valid

    def zero_pad_rows(p):
        # only the small halo strips are zeroed; the interior is fully overwritten
        z = jnp.zeros((p.shape[0], 2 * W), p.dtype)
        p[:, pl.ds(base - 2 * W, 2 * W)] = z        # rows above the image
        p[:, pl.ds(base + HW, 2 * W)] = z           # rows below the image

    def conv3x3_bn_relu(p, w_ref, s_ref, b_ref):
        # out[c, m*W+n] = sum_{ky,kx,ci} w[ky,kx][c,ci] * img[ci, m+ky-1, n+kx-1]
        acc = None
        for kx in range(3):
            part = None
            for ky in range(3):
                off = base + (ky - 1) * W + (kx - 1)
                patch = p[:, pl.ds(off, HW)]                      # (Cin, HW) bf16
                d = jnp.dot(w_ref[ky * 3 + kx], patch,
                            preferred_element_type=jnp.float32)   # (Cst, HW) f32
                part = d if part is None else part + d
            if kx == 0:
                part = jnp.where(mask_l, part, 0.0)
            elif kx == 2:
                part = jnp.where(mask_r, part, 0.0)
            acc = part if acc is None else acc + part
        # folded BN (eval mode) + ReLU, f32 epilogue
        return jnp.maximum(acc * s_ref[...] + b_ref[...], 0.0)

    # ---- stage 0: input -> padded (Cin, L) scratch (one contiguous store) ----
    zero_pad_rows(p1)
    p1[:, pl.ds(base, HW)] = x_ref[0]

    # ---- conv1 + BN + ReLU ----------------------------------------------------
    h1 = conv3x3_bn_relu(p1, w1_ref, s1_ref, b1_ref)              # (Cmid, HW) f32
    zero_pad_rows(p2)
    p2[:, pl.ds(base, HW)] = h1.astype(p2.dtype)

    # ---- conv2 + BN + ReLU ----------------------------------------------------
    h2 = conv3x3_bn_relu(p2, w2_ref, s2_ref, b2_ref)              # (Cmid, HW) f32
    zero_pad_rows(p3)
    p3[:, pl.ds(base, HW)] = h2.astype(p3.dtype)

    # ---- ConvTranspose2d(3, s=2, p=1, op=1): polyphase decomposition ----------
    #   out(2m  ,2n  ) = Wee  @ h[m,n]
    #   out(2m  ,2n+1) = Weo0 @ h[m,n] + Weo1 @ h[m,n+1]
    #   out(2m+1,2n  ) = Woe0 @ h[m,n] + Woe1 @ h[m+1,n]
    #   out(2m+1,2n+1) = Woo0 @ h[m,n] + Woo1 @ h[m,n+1] + Woo2 @ h[m+1,n] + Woo3 @ h[m+1,n+1]
    t00 = p3[:, pl.ds(base, HW)]
    t01 = p3[:, pl.ds(base + 1, HW)]          # h[m, n+1]   (wraps at n = W-1 -> mask)
    t10 = p3[:, pl.ds(base + W, HW)]          # h[m+1, n]   (bottom halo is zero)
    t11 = p3[:, pl.ds(base + W + 1, HW)]      # h[m+1, n+1] (bottom halo zero, mask right)
    zero_p = jnp.zeros_like(t01)
    t01 = jnp.where(mask_r, t01, zero_p)
    t11 = jnp.where(mask_r, t11, zero_p)

    s3 = s3_ref[...]
    b3 = b3_ref[...]

    def phase(acc):
        return jnp.maximum(acc * s3 + b3, 0.0).astype(o_ref.dtype)

    mm = lambda i, t: jnp.dot(wd_ref[i], t, preferred_element_type=jnp.float32)
    # phase index = 2 * row_parity + col_parity
    o_ref[0, 0] = phase(mm(0, t00))                                         # (even, even)
    o_ref[0, 1] = phase(mm(1, t00) + mm(2, t01))                            # (even, odd)
    o_ref[0, 2] = phase(mm(3, t00) + mm(4, t10))                            # (odd,  even)
    o_ref[0, 3] = phase(mm(5, t00) + mm(6, t01) + mm(7, t10) + mm(8, t11))  # (odd,  odd)


# ---------------------------------------------------------------------------
# Parameter preparation (BN folding, per-tap weight slabs, bf16 cast)
# ---------------------------------------------------------------------------
def _fold_bn(conv_bias, gamma, beta, mean, var, eps=1e-5):
    s = gamma / jnp.sqrt(var + eps)
    b = (conv_bias - mean) * s + beta
    return s.astype(jnp.float32), b.astype(jnp.float32)


def _prep_conv_taps(w_oihw):
    # torch Conv2d weight (Cout, Cin, 3, 3) -> (9, Cout, Cin), tap index = ky*3+kx
    cout, cin = w_oihw.shape[0], w_oihw.shape[1]
    return jnp.transpose(w_oihw, (2, 3, 0, 1)).reshape(9, cout, cin).astype(jnp.bfloat16)


def _prep_deconv_taps(wt_iohw):
    # torch ConvTranspose2d weight (Cin, Cout, 3, 3) -> equivalent forward-conv
    # kernel (spatial flip), taps as (Cout, Cin) matrices in polyphase order.
    wf = jnp.transpose(wt_iohw[:, :, ::-1, ::-1], (2, 3, 1, 0))   # (ky, kx, Cout, Cin)
    taps = [
        wf[1, 1],                                      # 0: ee      (t00)
        wf[1, 0], wf[1, 2],                            # 1-2: eo    (t00, t01)
        wf[0, 1], wf[2, 1],                            # 3-4: oe    (t00, t10)
        wf[0, 0], wf[0, 2], wf[2, 0], wf[2, 2],        # 5-8: oo    (t00, t01, t10, t11)
    ]
    return jnp.stack(taps, axis=0).astype(jnp.bfloat16)           # (9, Cout, Cin)


# ---------------------------------------------------------------------------
# pallas_call wrapper
# ---------------------------------------------------------------------------
def _fused_call(x_flat, w1, s1, b1, w2, s2, b2, wd, s3, b3, *, H, W):
    N, Cin, HW = x_flat.shape
    Cmid = s1.shape[0]
    Cout = s3.shape[0]

    base = -(-(2 * W) // 128) * 128          # 128-aligned interior start (>= 2W)
    L = base + HW + 2 * W                    # flat padded activation length

    const2 = lambda n: (0, 0)
    const3 = lambda n: (0, 0, 0)

    kern = functools.partial(_fused_upsample_kernel, H=H, W=W, base=base)

    grid_spec = pltpu.PrefetchScalarGridSpec(
        num_scalar_prefetch=0,
        grid=(N,),
        in_specs=[
            pl.BlockSpec((1, Cin, HW), lambda n: (n, 0, 0)),
            pl.BlockSpec((9, Cmid, Cin), const3),
            pl.BlockSpec((Cmid, 1), const2),
            pl.BlockSpec((Cmid, 1), const2),
            pl.BlockSpec((9, Cmid, Cmid), const3),
            pl.BlockSpec((Cmid, 1), const2),
            pl.BlockSpec((Cmid, 1), const2),
            pl.BlockSpec((9, Cout, Cmid), const3),
            pl.BlockSpec((Cout, 1), const2),
            pl.BlockSpec((Cout, 1), const2),
        ],
        out_specs=pl.BlockSpec((1, 4, Cout, HW), lambda n: (n, 0, 0, 0)),
        scratch_shapes=[
            pltpu.VMEM((Cin, L), jnp.bfloat16),    # padded input
            pltpu.VMEM((Cmid, L), jnp.bfloat16),   # padded conv1 output
            pltpu.VMEM((Cmid, L), jnp.bfloat16),   # padded conv2 output
        ],
    )

    # --- vmem limit from actual (tile-padded) buffer sizes, capped for v7x ----
    def ceil_to(v, m):
        return -(-v // m) * m

    def padded_bytes(shape, dtype):
        it = jnp.dtype(dtype).itemsize
        sub = {4: 8, 2: 16, 1: 32}.get(it, 8)
        dims = list(shape)
        dims[-1] = ceil_to(dims[-1], 128)
        if len(dims) >= 2:
            dims[-2] = ceil_to(dims[-2], sub)
        n = it
        for d in dims:
            n *= int(d)
        return n

    blocks = [
        ((1, Cin, HW), jnp.bfloat16),
        ((9, Cmid, Cin), jnp.bfloat16), ((Cmid, 1), jnp.float32), ((Cmid, 1), jnp.float32),
        ((9, Cmid, Cmid), jnp.bfloat16), ((Cmid, 1), jnp.float32), ((Cmid, 1), jnp.float32),
        ((9, Cout, Cmid), jnp.bfloat16), ((Cout, 1), jnp.float32), ((Cout, 1), jnp.float32),
        ((1, 4, Cout, HW), jnp.float32),
    ]
    scratch = [((Cin, L), jnp.bfloat16), ((Cmid, L), jnp.bfloat16), ((Cmid, L), jnp.bfloat16)]
    vmem_need = (2 * sum(padded_bytes(s, d) for s, d in blocks)       # double-buffered
                 + sum(padded_bytes(s, d) for s, d in scratch))
    vmem_limit = int(min(48 * 1024 * 1024, max(8 * 1024 * 1024, 4 * vmem_need)))

    return pl.pallas_call(
        kern,
        out_shape=jax.ShapeDtypeStruct((N, 4, Cout, HW), jnp.float32),
        grid_spec=grid_spec,
        compiler_params=pltpu.CompilerParams(
            dimension_semantics=("parallel",),
            vmem_limit_bytes=vmem_limit),
    )(x_flat, w1, s1, b1, w2, s2, b2, wd, s3, b3)


def upsample_layer_forward(x_nchw, skip_nchw, params):
    """Equivalent of UpSampleLayer.forward(x, out); BN in eval mode; NCHW in/out."""
    N, Cin, H, W = x_nchw.shape

    w1 = _prep_conv_taps(params["w1"])
    s1, b1 = _fold_bn(params["b1"], *params["bn1"])
    w2 = _prep_conv_taps(params["w2"])
    s2, b2 = _fold_bn(params["b2"], *params["bn2"])
    wd = _prep_deconv_taps(params["wt"])
    s3, b3 = _fold_bn(params["bt"], *params["bn3"])
    Cout = s3.shape[0]

    # NCHW is already channel-major / HW-contiguous: a metadata-only reshape gives
    # the channels-on-sublane / spatial-on-lane layout the kernel computes in.
    x_flat = x_nchw.reshape(N, Cin, H * W).astype(jnp.bfloat16)

    u_ph = _fused_call(x_flat, w1,
                       s1.reshape(-1, 1), b1.reshape(-1, 1), w2,
                       s2.reshape(-1, 1), b2.reshape(-1, 1), wd,
                       s3.reshape(-1, 1), b3.reshape(-1, 1), H=H, W=W)

    # (N, 4, Cout, H*W), phase = 2*row_parity + col_parity -> NCHW (N, Cout, 2H, 2W)
    u = u_ph.reshape(N, 2, 2, Cout, H, W)                       # (n, p, q, c, m, b)
    u = jnp.transpose(u, (0, 3, 4, 1, 5, 2)).reshape(N, Cout, 2 * H, 2 * W)
    # channel concat with the skip tensor (NCHW), matching torch.cat(dim=1)
    return jnp.concatenate([u, skip_nchw.astype(jnp.float32)], axis=1)


# ---------------------------------------------------------------------------
# Synthetic params + pure-XLA reference for validation
# ---------------------------------------------------------------------------
def init_params(key, in_ch, out_ch):
    mid = out_ch * 2
    ks = jax.random.split(key, 9)

    def bn(k, c):
        kg, kb, km, kv = jax.random.split(k, 4)
        gamma = 1.0 + 0.1 * jax.random.normal(kg, (c,), jnp.float32)
        beta = 0.1 * jax.random.normal(kb, (c,), jnp.float32)
        mean = 0.05 * jax.random.normal(km, (c,), jnp.float32)
        var = jnp.abs(1.0 + 0.1 * jax.random.normal(kv, (c,), jnp.float32))
        return gamma, beta, mean, var

    p = {}
    p["w1"] = 0.2 * jax.random.normal(ks[0], (mid, in_ch, 3, 3), jnp.float32)
    p["b1"] = 0.05 * jax.random.normal(ks[1], (mid,), jnp.float32)
    p["bn1"] = bn(ks[2], mid)
    p["w2"] = 0.2 * jax.random.normal(ks[3], (mid, mid, 3, 3), jnp.float32)
    p["b2"] = 0.05 * jax.random.normal(ks[4], (mid,), jnp.float32)
    p["bn2"] = bn(ks[5], mid)
    p["wt"] = 0.2 * jax.random.normal(ks[6], (mid, out_ch, 3, 3), jnp.float32)
    p["bt"] = 0.05 * jax.random.normal(ks[7], (out_ch,), jnp.float32)
    p["bn3"] = bn(ks[8], out_ch)
    return p


def _reference_forward(x_nchw, skip_nchw, params):
    """Pure-JAX (XLA conv, f32) reference for validation."""
    dn = ("NHWC", "HWIO", "NHWC")
    x = jnp.transpose(x_nchw, (0, 2, 3, 1)).astype(jnp.float32)
    skip = jnp.transpose(skip_nchw, (0, 2, 3, 1)).astype(jnp.float32)

    def cbr(h, w, s, b, lhs_dil=None, pad=((1, 1), (1, 1))):
        y = jax.lax.conv_general_dilated(h, w, (1, 1), pad,
                                         lhs_dilation=lhs_dil, dimension_numbers=dn)
        return jnp.maximum(y * s + b, 0.0)

    w1 = jnp.transpose(params["w1"], (2, 3, 1, 0)); s1, b1 = _fold_bn(params["b1"], *params["bn1"])
    w2 = jnp.transpose(params["w2"], (2, 3, 1, 0)); s2, b2 = _fold_bn(params["b2"], *params["bn2"])
    wt = jnp.transpose(params["wt"][:, :, ::-1, ::-1], (2, 3, 0, 1))
    s3, b3 = _fold_bn(params["bt"], *params["bn3"])

    h = cbr(x, w1, s1, b1)
    h = cbr(h, w2, s2, b2)
    u = cbr(h, wt, s3, b3, lhs_dil=(2, 2), pad=((1, 2), (1, 2)))
    cat = jnp.concatenate([u, skip], axis=-1)
    return jnp.transpose(cat, (0, 3, 1, 2))


if __name__ == "__main__":
    key = jax.random.PRNGKey(0)
    k_x, k_skip, k_params = jax.random.split(key, 3)

    N, in_ch, out_ch, H, W = 2, 4, 4, 16, 16
    x = jax.random.normal(k_x, (N, in_ch, H, W), jnp.float32)               # NCHW like PyTorch
    skip = jax.random.normal(k_skip, (N, out_ch, 2 * H, 2 * W), jnp.float32)
    params = init_params(k_params, in_ch, out_ch)

    fwd = jax.jit(upsample_layer_forward)
    out = jax.block_until_ready(fwd(x, skip, params))
    assert out.shape == (N, 2 * out_ch, 2 * H, 2 * W), out.shape

    ref = jax.block_until_ready(_reference_forward(x, skip, params))
    err = float(jnp.max(jnp.abs(out - ref)))
    # bf16 matmul operands -> bf16-appropriate tolerance vs the f32 reference
    assert jnp.allclose(out, ref, atol=1e-1, rtol=5e-2), err

    print("KERNEL_OK")
</pallas_src>

<mosaic_0001>
module attributes {stable_mosaic.version = 11 : i64} {
  func.func @_fused_upsample_kernel(%arg0: i32, %arg1: memref<1x4x256xbf16, #tpu.memory_space<vmem>>, %arg2: memref<9x8x4xbf16, #tpu.memory_space<vmem>>, %arg3: memref<8x1xf32, #tpu.memory_space<vmem>>, %arg4: memref<8x1xf32, #tpu.memory_space<vmem>>, %arg5: memref<9x8x8xbf16, #tpu.memory_space<vmem>>, %arg6: memref<8x1xf32, #tpu.memory_space<vmem>>, %arg7: memref<8x1xf32, #tpu.memory_space<vmem>>, %arg8: memref<9x4x8xbf16, #tpu.memory_space<vmem>>, %arg9: memref<4x1xf32, #tpu.memory_space<vmem>>, %arg10: memref<4x1xf32, #tpu.memory_space<vmem>>, %arg11: memref<1x4x4x256xf32, #tpu.memory_space<vmem>>, %arg12: memref<4x416xbf16, #tpu.memory_space<vmem>>, %arg13: memref<8x416xbf16, #tpu.memory_space<vmem>>, %arg14: memref<8x416xbf16, #tpu.memory_space<vmem>>) attributes {dimension_semantics = [#tpu.dimension_semantics<parallel>], iteration_bounds = array<i64: 2>, scalar_prefetch = 0 : i64, scratch_operands = 3 : i64, tpu.core_type = #tpu.core_type<tc>, window_params = [{transform_indices = @transform_0, window_bounds = array<i64: 1, 4, 256>}, {pipeline_mode = #tpu.pipeline_mode<synchronous>, transform_indices = @transform_1, window_bounds = array<i64: 9, 8, 4>}, {pipeline_mode = #tpu.pipeline_mode<synchronous>, transform_indices = @transform_2, window_bounds = array<i64: 8, 1>}, {pipeline_mode = #tpu.pipeline_mode<synchronous>, transform_indices = @transform_3, window_bounds = array<i64: 8, 1>}, {pipeline_mode = #tpu.pipeline_mode<synchronous>, transform_indices = @transform_4, window_bounds = array<i64: 9, 8, 8>}, {pipeline_mode = #tpu.pipeline_mode<synchronous>, transform_indices = @transform_5, window_bounds = array<i64: 8, 1>}, {pipeline_mode = #tpu.pipeline_mode<synchronous>, transform_indices = @transform_6, window_bounds = array<i64: 8, 1>}, {pipeline_mode = #tpu.pipeline_mode<synchronous>, transform_indices = @transform_7, window_bounds = array<i64: 9, 4, 8>}, {pipeline_mode = #tpu.pipeline_mode<synchronous>, transform_indices = @transform_8, window_bounds = array<i64: 4, 1>}, {pipeline_mode = #tpu.pipeline_mode<synchronous>, transform_indices = @transform_9, window_bounds = array<i64: 4, 1>}, {transform_indices = @transform_10, window_bounds = array<i64: 1, 4, 4, 256>}]} {
    %0 = tpu.iota {dimensions = array<i32: 1>} : vector<1x256xi32>
    %c16_i32 = arith.constant 16 : i32
    %c0_i32 = arith.constant 0 : i32
    %1 = arith.cmpi eq, %c16_i32, %c0_i32 : i32
    %c1_i32 = arith.constant 1 : i32
    %2 = arith.select %1, %c1_i32, %c16_i32 : i32
    %3 = vector.broadcast %2 : i32 to vector<1x256xi32>
    %4 = arith.remsi %0, %3 : vector<1x256xi32>
    %c0_i32_0 = arith.constant 0 : i32
    %5 = vector.broadcast %c0_i32_0 : i32 to vector<1x256xi32>
    %6 = arith.cmpi ne, %4, %5 : vector<1x256xi32>
    %c0_i32_1 = arith.constant 0 : i32
    %7 = vector.broadcast %c0_i32_1 : i32 to vector<1x256xi32>
    %8 = arith.cmpi slt, %4, %7 : vector<1x256xi32>
    %c0_i32_2 = arith.constant 0 : i32
    %9 = arith.cmpi slt, %2, %c0_i32_2 : i32
    %10 = vector.broadcast %9 : i1 to vector<1x256xi1>
    %11 = vector.broadcast %10 : vector<1x256xi1> to vector<1x256xi1>
    %12 = arith.xori %8, %11 : vector<1x256xi1>
    %13 = arith.andi %12, %6 : vector<1x256xi1>
    %14 = vector.broadcast %2 : i32 to vector<1x256xi32>
    %15 = arith.addi %4, %14 : vector<1x256xi32>
    %16 = arith.select %13, %15, %4 : vector<1x256xi1>, vector<1x256xi32>
    %c0_i32_3 = arith.constant 0 : i32
    %17 = vector.broadcast %c0_i32_3 : i32 to vector<1x256xi32>
    %18 = arith.cmpi ne, %16, %17 : vector<1x256xi32>
    %c15_i32 = arith.constant 15 : i32
    %19 = vector.broadcast %c15_i32 : i32 to vector<1x256xi32>
    %20 = arith.cmpi ne, %16, %19 : vector<1x256xi32>
    %cst = arith.constant 0.000000e+00 : bf16
    %21 = vector.broadcast %cst : bf16 to vector<4x32xbf16>
    %c0 = arith.constant 0 : index
    %c96 = arith.constant 96 : index
    %22 = vector.load %arg12[%c0, %c96] : memref<4x416xbf16, #tpu.memory_space<vmem>>, vector<4x32xbf16>
    tpu.vector_store %arg12[%c0, %c96], %21 {strides = array<i32>} : memref<4x416xbf16, #tpu.memory_space<vmem>>, vector<4x32xbf16>,
    %c0_4 = arith.constant 0 : index
    %c384 = arith.constant 384 : index
    %23 = vector.load %arg12[%c0_4, %c384] : memref<4x416xbf16, #tpu.memory_space<vmem>>, vector<4x32xbf16>
    tpu.vector_store %arg12[%c0_4, %c384], %21 {strides = array<i32>} : memref<4x416xbf16, #tpu.memory_space<vmem>>, vector<4x32xbf16>,
    %c0_5 = arith.constant 0 : index
    %c0_6 = arith.constant 0 : index
    %c0_7 = arith.constant 0 : index
    %24 = vector.load %arg1[%c0_5, %c0_6, %c0_7] : memref<1x4x256xbf16, #tpu.memory_space<vmem>>, vector<1x4x256xbf16>
    %25 = vector.shape_cast %24 : vector<1x4x256xbf16> to vector<4x256xbf16>
    %c0_8 = arith.constant 0 : index
    %c128 = arith.constant 128 : index
    %26 = vector.load %arg12[%c0_8, %c128] : memref<4x416xbf16, #tpu.memory_space<vmem>>, vector<4x256xbf16>
    tpu.vector_store %arg12[%c0_8, %c128], %25 {strides = array<i32>} : memref<4x416xbf16, #tpu.memory_space<vmem>>, vector<4x256xbf16>,
    %c0_9 = arith.constant 0 : index
    %c111 = arith.constant 111 : index
    %27 = vector.load %arg12[%c0_9, %c111] : memref<4x416xbf16, #tpu.memory_space<vmem>>, vector<4x256xbf16>
    %c0_10 = arith.constant 0 : index
    %c0_11 = arith.constant 0 : index
    %c0_12 = arith.constant 0 : index
    %28 = vector.load %arg2[%c0_10, %c0_11, %c0_12] : memref<9x8x4xbf16, #tpu.memory_space<vmem>>, vector<1x8x4xbf16>
    %29 = vector.shape_cast %28 : vector<1x8x4xbf16> to vector<8x4xbf16>
    %cst_13 = arith.constant dense<0.000000e+00> : vector<8x256xf32>
    %30 = tpu.matmul %29, %27, %cst_13 {dimension_numbers = #tpu.dot_dimension_numbers<[1], [0], [0], [1], [0, 0, 1, 1], [], []>} : vector<8x4xbf16>, vector<4x256xbf16>, vector<8x256xf32> -> vector<8x256xf32>
    %c0_14 = arith.constant 0 : index
    %c127 = arith.constant 127 : index
    %31 = vector.load %arg12[%c0_14, %c127] : memref<4x416xbf16, #tpu.memory_space<vmem>>, vector<4x256xbf16>
    %c3 = arith.constant 3 : index
    %c0_15 = arith.constant 0 : index
    %c0_16 = arith.constant 0 : index
    %32 = vector.load %arg2[%c3, %c0_15, %c0_16] : memref<9x8x4xbf16, #tpu.memory_space<vmem>>, vector<1x8x4xbf16>
    %33 = vector.shape_cast %32 : vector<1x8x4xbf16> to vector<8x4xbf16>
    %cst_17 = arith.constant dense<0.000000e+00> : vector<8x256xf32>
    %34 = tpu.matmul %33, %31, %cst_17 {dimension_numbers = #tpu.dot_dimension_numbers<[1], [0], [0], [1], [0, 0, 1, 1], [], []>} : vector<8x4xbf16>, vector<4x256xbf16>, vector<8x256xf32> -> vector<8x256xf32>
    %35 = arith.addf %30, %34 : vector<8x256xf32>
    %c0_18 = arith.constant 0 : index
    %c143 = arith.constant 143 : index
    %36 = vector.load %arg12[%c0_18, %c143] : memref<4x416xbf16, #tpu.memory_space<vmem>>, vector<4x256xbf16>
    %c6 = arith.constant 6 : index
    %c0_19 = arith.constant 0 : index
    %c0_20 = arith.constant 0 : index
    %37 = vector.load %arg2[%c6, %c0_19, %c0_20] : memref<9x8x4xbf16, #tpu.memory_space<vmem>>, vector<1x8x4xbf16>
    %38 = vector.shape_cast %37 : vector<1x8x4xbf16> to vector<8x4xbf16>
    %cst_21 = arith.constant dense<0.000000e+00> : vector<8x256xf32>
    %39 = tpu.matmul %38, %36, %cst_21 {dimension_numbers = #tpu.dot_dimension_numbers<[1], [0], [0], [1], [0, 0, 1, 1], [], []>} : vector<8x4xbf16>, vector<4x256xbf16>, vector<8x256xf32> -> vector<8x256xf32>
    %40 = arith.addf %35, %39 : vector<8x256xf32>
    %cst_22 = arith.constant 0.000000e+00 : f32
    %41 = vector.shape_cast %18 : vector<1x256xi1> to vector<1x256xi1>
    %42 = vector.broadcast %41 : vector<1x256xi1> to vector<8x256xi1>
    %43 = vector.broadcast %cst_22 : f32 to vector<8x256xf32>
    %44 = arith.select %42, %40, %43 : vector<8x256xi1>, vector<8x256xf32>
    %c0_23 = arith.constant 0 : index
    %c112 = arith.constant 112 : index
    %45 = vector.load %arg12[%c0_23, %c112] : memref<4x416xbf16, #tpu.memory_space<vmem>>, vector<4x256xbf16>
    %c1 = arith.constant 1 : index
    %c0_24 = arith.constant 0 : index
    %c0_25 = arith.constant 0 : index
    %46 = vector.load %arg2[%c1, %c0_24, %c0_25] : memref<9x8x4xbf16, #tpu.memory_space<vmem>>, vector<1x8x4xbf16>
    %47 = vector.shape_cast %46 : vector<1x8x4xbf16> to vector<8x4xbf16>
    %cst_26 = arith.constant dense<0.000000e+00> : vector<8x256xf32>
    %48 = tpu.matmul %47, %45, %cst_26 {dimension_numbers = #tpu.dot_dimension_numbers<[1], [0], [0], [1], [0, 0, 1, 1], [], []>} : vector<8x4xbf16>, vector<4x256xbf16>, vector<8x256xf32> -> vector<8x256xf32>
    %c0_27 = arith.constant 0 : index
    %c128_28 = arith.constant 128 : index
    %49 = vector.load %arg12[%c0_27, %c128_28] : memref<4x416xbf16, #tpu.memory_space<vmem>>, vector<4x256xbf16>
    %c4 = arith.constant 4 : index
    %c0_29 = arith.constant 0 : index
    %c0_30 = arith.constant 0 : index
    %50 = vector.load %arg2[%c4, %c0_29, %c0_30] : memref<9x8x4xbf16, #tpu.memory_space<vmem>>, vector<1x8x4xbf16>
    %51 = vector.shape_cast %50 : vector<1x8x4xbf16> to vector<8x4xbf16>
    %cst_31 = arith.constant dense<0.000000e+00> : vector<8x256xf32>
    %52 = tpu.matmul %51, %49, %cst_31 {dimension_numbers = #tpu.dot_dimension_numbers<[1], [0], [0], [1], [0, 0, 1, 1], [], []>} : vector<8x4xbf16>, vector<4x256xbf16>, vector<8x256xf32> -> vector<8x256xf32>
    %53 = arith.addf %48, %52 : vector<8x256xf32>
    %c0_32 = arith.constant 0 : index
    %c144 = arith.constant 144 : index
    %54 = vector.load %arg12[%c0_32, %c144] : memref<4x416xbf16, #tpu.memory_space<vmem>>, vector<4x256xbf16>
    %c7 = arith.constant 7 : index
    %c0_33 = arith.constant 0 : index
    %c0_34 = arith.constant 0 : index
    %55 = vector.load %arg2[%c7, %c0_33, %c0_34] : memref<9x8x4xbf16, #tpu.memory_space<vmem>>, vector<1x8x4xbf16>
    %56 = vector.shape_cast %55 : vector<1x8x4xbf16> to vector<8x4xbf16>
    %cst_35 = arith.constant dense<0.000000e+00> : vector<8x256xf32>
    %57 = tpu.matmul %56, %54, %cst_35 {dimension_numbers = #tpu.dot_dimension_numbers<[1], [0], [0], [1], [0, 0, 1, 1], [], []>} : vector<8x4xbf16>, vector<4x256xbf16>, vector<8x256xf32> -> vector<8x256xf32>
    %58 = arith.addf %53, %57 : vector<8x256xf32>
    %59 = arith.addf %44, %58 : vector<8x256xf32>
    %c0_36 = arith.constant 0 : index
    %c113 = arith.constant 113 : index
    %60 = vector.load %arg12[%c0_36, %c113] : memref<4x416xbf16, #tpu.memory_space<vmem>>, vector<4x256xbf16>
    %c2 = arith.constant 2 : index
    %c0_37 = arith.constant 0 : index
    %c0_38 = arith.constant 0 : index
    %61 = vector.load %arg2[%c2, %c0_37, %c0_38] : memref<9x8x4xbf16, #tpu.memory_space<vmem>>, vector<1x8x4xbf16>
    %62 = vector.shape_cast %61 : vector<1x8x4xbf16> to vector<8x4xbf16>
    %cst_39 = arith.constant dense<0.000000e+00> : vector<8x256xf32>
    %63 = tpu.matmul %62, %60, %cst_39 {dimension_numbers = #tpu.dot_dimension_numbers<[1], [0], [0], [1], [0, 0, 1, 1], [], []>} : vector<8x4xbf16>, vector<4x256xbf16>, vector<8x256xf32> -> vector<8x256xf32>
    %c0_40 = arith.constant 0 : index
    %c129 = arith.constant 129 : index
    %64 = vector.load %arg12[%c0_40, %c129] : memref<4x416xbf16, #tpu.memory_space<vmem>>, vector<4x256xbf16>
    %c5 = arith.constant 5 : index
    %c0_41 = arith.constant 0 : index
    %c0_42 = arith.constant 0 : index
    %65 = vector.load %arg2[%c5, %c0_41, %c0_42] : memref<9x8x4xbf16, #tpu.memory_space<vmem>>, vector<1x8x4xbf16>
    %66 = vector.shape_cast %65 : vector<1x8x4xbf16> to vector<8x4xbf16>
    %cst_43 = arith.constant dense<0.000000e+00> : vector<8x256xf32>
    %67 = tpu.matmul %66, %64, %cst_43 {dimension_numbers = #tpu.dot_dimension_numbers<[1], [0], [0], [1], [0, 0, 1, 1], [], []>} : vector<8x4xbf16>, vector<4x256xbf16>, vector<8x256xf32> -> vector<8x256xf32>
    %68 = arith.addf %63, %67 : vector<8x256xf32>
    %c0_44 = arith.constant 0 : index
    %c145 = arith.constant 145 : index
    %69 = vector.load %arg12[%c0_44, %c145] : memref<4x416xbf16, #tpu.memory_space<vmem>>, vector<4x256xbf16>
    %c8 = arith.constant 8 : index
    %c0_45 = arith.constant 0 : index
    %c0_46 = arith.constant 0 : index
    %70 = vector.load %arg2[%c8, %c0_45, %c0_46] : memref<9x8x4xbf16, #tpu.memory_space<vmem>>, vector<1x8x4xbf16>
    %71 = vector.shape_cast %70 : vector<1x8x4xbf16> to vector<8x4xbf16>
    %cst_47 = arith.constant dense<0.000000e+00> : vector<8x256xf32>
    %72 = tpu.matmul %71, %69, %cst_47 {dimension_numbers = #tpu.dot_dimension_numbers<[1], [0], [0], [1], [0, 0, 1, 1], [], []>} : vector<8x4xbf16>, vector<4x256xbf16>, vector<8x256xf32> -> vector<8x256xf32>
    %73 = arith.addf %68, %72 : vector<8x256xf32>
    %cst_48 = arith.constant 0.000000e+00 : f32
    %74 = vector.shape_cast %20 : vector<1x256xi1> to vector<1x256xi1>
    %75 = vector.broadcast %74 : vector<1x256xi1> to vector<8x256xi1>
    %76 = vector.broadcast %cst_48 : f32 to vector<8x256xf32>
    %77 = arith.select %75, %73, %76 : vector<8x256xi1>, vector<8x256xf32>
    %78 = arith.addf %59, %77 : vector<8x256xf32>
    %c0_49 = arith.constant 0 : index
    %c0_50 = arith.constant 0 : index
    %79 = vector.load %arg3[%c0_49, %c0_50] : memref<8x1xf32, #tpu.memory_space<vmem>>, vector<8x1xf32>
    %80 = vector.broadcast %79 : vector<8x1xf32> to vector<8x256xf32>
    %81 = arith.mulf %78, %80 : vector<8x256xf32>
    %c0_51 = arith.constant 0 : index
    %c0_52 = arith.constant 0 : index
    %82 = vector.load %arg4[%c0_51, %c0_52] : memref<8x1xf32, #tpu.memory_space<vmem>>, vector<8x1xf32>
    %83 = vector.broadcast %82 : vector<8x1xf32> to vector<8x256xf32>
    %84 = arith.addf %81, %83 : vector<8x256xf32>
    %cst_53 = arith.constant 0.000000e+00 : f32
    %85 = vector.broadcast %cst_53 : f32 to vector<8x256xf32>
    %86 = arith.maximumf %84, %85 : vector<8x256xf32>
    %cst_54 = arith.constant 0.000000e+00 : bf16
    %87 = vector.broadcast %cst_54 : bf16 to vector<8x32xbf16>
    %c0_55 = arith.constant 0 : index
    %c96_56 = arith.constant 96 : index
    %88 = vector.load %arg13[%c0_55, %c96_56] : memref<8x416xbf16, #tpu.memory_space<vmem>>, vector<8x32xbf16>
    tpu.vector_store %arg13[%c0_55, %c96_56], %87 {strides = array<i32>} : memref<8x416xbf16, #tpu.memory_space<vmem>>, vector<8x32xbf16>,
    %c0_57 = arith.constant 0 : index
    %c384_58 = arith.constant 384 : index
    %89 = vector.load %arg13[%c0_57, %c384_58] : memref<8x416xbf16, #tpu.memory_space<vmem>>, vector<8x32xbf16>
    tpu.vector_store %arg13[%c0_57, %c384_58], %87 {strides = array<i32>} : memref<8x416xbf16, #tpu.memory_space<vmem>>, vector<8x32xbf16>,
    %90 = arith.truncf %86 : vector<8x256xf32> to vector<8x256xbf16>
    %c0_59 = arith.constant 0 : index
    %c128_60 = arith.constant 128 : index
    %91 = vector.load %arg13[%c0_59, %c128_60] : memref<8x416xbf16, #tpu.memory_space<vmem>>, vector<8x256xbf16>
    tpu.vector_store %arg13[%c0_59, %c128_60], %90 {strides = array<i32>} : memref<8x416xbf16, #tpu.memory_space<vmem>>, vector<8x256xbf16>,
    %c0_61 = arith.constant 0 : index
    %c111_62 = arith.constant 111 : index
    %92 = vector.load %arg13[%c0_61, %c111_62] : memref<8x416xbf16, #tpu.memory_space<vmem>>, vector<8x256xbf16>
    %c0_63 = arith.constant 0 : index
    %c0_64 = arith.constant 0 : index
    %c0_65 = arith.constant 0 : index
    %93 = vector.load %arg5[%c0_63, %c0_64, %c0_65] : memref<9x8x8xbf16, #tpu.memory_space<vmem>>, vector<1x8x8xbf16>
    %94 = vector.shape_cast %93 : vector<1x8x8xbf16> to vector<8x8xbf16>
    %cst_66 = arith.constant dense<0.000000e+00> : vector<8x256xf32>
    %95 = tpu.matmul %94, %92, %cst_66 {dimension_numbers = #tpu.dot_dimension_numbers<[1], [0], [0], [1], [0, 0, 1, 1], [], []>} : vector<8x8xbf16>, vector<8x256xbf16>, vector<8x256xf32> -> vector<8x256xf32>
    %c0_67 = arith.constant 0 : index
    %c127_68 = arith.constant 127 : index
    %96 = vector.load %arg13[%c0_67, %c127_68] : memref<8x416xbf16, #tpu.memory_space<vmem>>, vector<8x256xbf16>
    %c3_69 = arith.constant 3 : index
    %c0_70 = arith.constant 0 : index
    %c0_71 = arith.constant 0 : index
    %97 = vector.load %arg5[%c3_69, %c0_70, %c0_71] : memref<9x8x8xbf16, #tpu.memory_space<vmem>>, vector<1x8x8xbf16>
    %98 = vector.shape_cast %97 : vector<1x8x8xbf16> to vector<8x8xbf16>
    %cst_72 = arith.constant dense<0.000000e+00> : vector<8x256xf32>
    %99 = tpu.matmul %98, %96, %cst_72 {dimension_numbers = #tpu.dot_dimension_numbers<[1], [0], [0], [1], [0, 0, 1, 1], [], []>} : vector<8x8xbf16>, vector<8x256xbf16>, vector<8x256xf32> -> vector<8x256xf32>
    %100 = arith.addf %95, %99 : vector<8x256xf32>
    %c0_73 = arith.constant 0 : index
    %c143_74 = arith.constant 143 : index
    %101 = vector.load %arg13[%c0_73, %c143_74] : memref<8x416xbf16, #tpu.memory_space<vmem>>, vector<8x256xbf16>
    %c6_75 = arith.constant 6 : index
    %c0_76 = arith.constant 0 : index
    %c0_77 = arith.constant 0 : index
    %102 = vector.load %arg5[%c6_75, %c0_76, %c0_77] : memref<9x8x8xbf16, #tpu.memory_space<vmem>>, vector<1x8x8xbf16>
    %103 = vector.shape_cast %102 : vector<1x8x8xbf16> to vector<8x8xbf16>
    %cst_78 = arith.constant dense<0.000000e+00> : vector<8x256xf32>
    %104 = tpu.matmul %103, %101, %cst_78 {dimension_numbers = #tpu.dot_dimension_numbers<[1], [0], [0], [1], [0, 0, 1, 1], [], []>} : vector<8x8xbf16>, vector<8x256xbf16>, vector<8x256xf32> -> vector<8x256xf32>
    %105 = arith.addf %100, %104 : vector<8x256xf32>
    %cst_79 = arith.constant 0.000000e+00 : f32
    %106 = vector.shape_cast %18 : vector<1x256xi1> to vector<1x256xi1>
    %107 = vector.broadcast %106 : vector<1x256xi1> to vector<8x256xi1>
    %108 = vector.broadcast %cst_79 : f32 to vector<8x256xf32>
    %109 = arith.select %107, %105, %108 : vector<8x256xi1>, vector<8x256xf32>
    %c0_80 = arith.constant 0 : index
    %c112_81 = arith.constant 112 : index
    %110 = vector.load %arg13[%c0_80, %c112_81] : memref<8x416xbf16, #tpu.memory_space<vmem>>, vector<8x256xbf16>
    %c1_82 = arith.constant 1 : index
    %c0_83 = arith.constant 0 : index
    %c0_84 = arith.constant 0 : index
    %111 = vector.load %arg5[%c1_82, %c0_83, %c0_84] : memref<9x8x8xbf16, #tpu.memory_space<vmem>>, vector<1x8x8xbf16>
    %112 = vector.shape_cast %111 : vector<1x8x8xbf16> to vector<8x8xbf16>
    %cst_85 = arith.constant dense<0.000000e+00> : vector<8x256xf32>
    %113 = tpu.matmul %112, %110, %cst_85 {dimension_numbers = #tpu.dot_dimension_numbers<[1], [0], [0], [1], [0, 0, 1, 1], [], []>} : vector<8x8xbf16>, vector<8x256xbf16>, vector<8x256xf32> -> vector<8x256xf32>
    %c0_86 = arith.constant 0 : index
    %c128_87 = arith.constant 128 : index
    %114 = vector.load %arg13[%c0_86, %c128_87] : memref<8x416xbf16, #tpu.memory_space<vmem>>, vector<8x256xbf16>
    %c4_88 = arith.constant 4 : index
    %c0_89 = arith.constant 0 : index
    %c0_90 = arith.constant 0 : index
    %115 = vector.load %arg5[%c4_88, %c0_89, %c0_90] : memref<9x8x8xbf16, #tpu.memory_space<vmem>>, vector<1x8x8xbf16>
    %116 = vector.shape_cast %115 : vector<1x8x8xbf16> to vector<8x8xbf16>
    %cst_91 = arith.constant dense<0.000000e+00> : vector<8x256xf32>
    %117 = tpu.matmul %116, %114, %cst_91 {dimension_numbers = #tpu.dot_dimension_numbers<[1], [0], [0], [1], [0, 0, 1, 1], [], []>} : vector<8x8xbf16>, vector<8x256xbf16>, vector<8x256xf32> -> vector<8x256xf32>
    %118 = arith.addf %113, %117 : vector<8x256xf32>
    %c0_92 = arith.constant 0 : index
    %c144_93 = arith.constant 144 : index
    %119 = vector.load %arg13[%c0_92, %c144_93] : memref<8x416xbf16, #tpu.memory_space<vmem>>, vector<8x256xbf16>
    %c7_94 = arith.constant 7 : index
    %c0_95 = arith.constant 0 : index
    %c0_96 = arith.constant 0 : index
    %120 = vector.load %arg5[%c7_94, %c0_95, %c0_96] : memref<9x8x8xbf16, #tpu.memory_space<vmem>>, vector<1x8x8xbf16>
    %121 = vector.shape_cast %120 : vector<1x8x8xbf16> to vector<8x8xbf16>
    %cst_97 = arith.constant dense<0.000000e+00> : vector<8x256xf32>
    %122 = tpu.matmul %121, %119, %cst_97 {dimension_numbers = #tpu.dot_dimension_numbers<[1], [0], [0], [1], [0, 0, 1, 1], [], []>} : vector<8x8xbf16>, vector<8x256xbf16>, vector<8x256xf32> -> vector<8x256xf32>
    %123 = arith.addf %118, %122 : vector<8x256xf32>
    %124 = arith.addf %109, %123 : vector<8x256xf32>
    %c0_98 = arith.constant 0 : index
    %c113_99 = arith.constant 113 : index
    %125 = vector.load %arg13[%c0_98, %c113_99] : memref<8x416xbf16, #tpu.memory_space<vmem>>, vector<8x256xbf16>
    %c2_100 = arith.constant 2 : index
    %c0_101 = arith.constant 0 : index
    %c0_102 = arith.constant 0 : index
    %126 = vector.load %arg5[%c2_100, %c0_101, %c0_102] : memref<9x8x8xbf16, #tpu.memory_space<vmem>>, vector<1x8x8xbf16>
    %127 = vector.shape_cast %126 : vector<1x8x8xbf16> to vector<8x8xbf16>
    %cst_103 = arith.constant dense<0.000000e+00> : vector<8x256xf32>
    %128 = tpu.matmul %127, %125, %cst_103 {dimension_numbers = #tpu.dot_dimension_numbers<[1], [0], [0], [1], [0, 0, 1, 1], [], []>} : vector<8x8xbf16>, vector<8x256xbf16>, vector<8x256xf32> -> vector<8x256xf32>
    %c0_104 = arith.constant 0 : index
    %c129_105 = arith.constant 129 : index
    %129 = vector.load %arg13[%c0_104, %c129_105] : memref<8x416xbf16, #tpu.memory_space<vmem>>, vector<8x256xbf16>
    %c5_106 = arith.constant 5 : index
    %c0_107 = arith.constant 0 : index
    %c0_108 = arith.constant 0 : index
    %130 = vector.load %arg5[%c5_106, %c0_107, %c0_108] : memref<9x8x8xbf16, #tpu.memory_space<vmem>>, vector<1x8x8xbf16>
    %131 = vector.shape_cast %130 : vector<1x8x8xbf16> to vector<8x8xbf16>
    %cst_109 = arith.constant dense<0.000000e+00> : vector<8x256xf32>
    %132 = tpu.matmul %131, %129, %cst_109 {dimension_numbers = #tpu.dot_dimension_numbers<[1], [0], [0], [1], [0, 0, 1, 1], [], []>} : vector<8x8xbf16>, vector<8x256xbf16>, vector<8x256xf32> -> vector<8x256xf32>
    %133 = arith.addf %128, %132 : vector<8x256xf32>
    %c0_110 = arith.constant 0 : index
    %c145_111 = arith.constant 145 : index
    %134 = vector.load %arg13[%c0_110, %c145_111] : memref<8x416xbf16, #tpu.memory_space<vmem>>, vector<8x256xbf16>
    %c8_112 = arith.constant 8 : index
    %c0_113 = arith.constant 0 : index
    %c0_114 = arith.constant 0 : index
    %135 = vector.load %arg5[%c8_112, %c0_113, %c0_114] : memref<9x8x8xbf16, #tpu.memory_space<vmem>>, vector<1x8x8xbf16>
    %136 = vector.shape_cast %135 : vector<1x8x8xbf16> to vector<8x8xbf16>
    %cst_115 = arith.constant dense<0.000000e+00> : vector<8x256xf32>
    %137 = tpu.matmul %136, %134, %cst_115 {dimension_numbers = #tpu.dot_dimension_numbers<[1], [0], [0], [1], [0, 0, 1, 1], [], []>} : vector<8x8xbf16>, vector<8x256xbf16>, vector<8x256xf32> -> vector<8x256xf32>
    %138 = arith.addf %133, %137 : vector<8x256xf32>
    %cst_116 = arith.constant 0.000000e+00 : f32
    %139 = vector.shape_cast %20 : vector<1x256xi1> to vector<1x256xi1>
    %140 = vector.broadcast %139 : vector<1x256xi1> to vector<8x256xi1>
    %141 = vector.broadcast %cst_116 : f32 to vector<8x256xf32>
    %142 = arith.select %140, %138, %141 : vector<8x256xi1>, vector<8x256xf32>
    %143 = arith.addf %124, %142 : vector<8x256xf32>
    %c0_117 = arith.constant 0 : index
    %c0_118 = arith.constant 0 : index
    %144 = vector.load %arg6[%c0_117, %c0_118] : memref<8x1xf32, #tpu.memory_space<vmem>>, vector<8x1xf32>
    %145 = vector.broadcast %144 : vector<8x1xf32> to vector<8x256xf32>
    %146 = arith.mulf %143, %145 : vector<8x256xf32>
    %c0_119 = arith.constant 0 : index
    %c0_120 = arith.constant 0 : index
    %147 = vector.load %arg7[%c0_119, %c0_120] : memref<8x1xf32, #tpu.memory_space<vmem>>, vector<8x1xf32>
    %148 = vector.broadcast %147 : vector<8x1xf32> to vector<8x256xf32>
    %149 = arith.addf %146, %148 : vector<8x256xf32>
    %cst_121 = arith.constant 0.000000e+00 : f32
    %150 = vector.broadcast %cst_121 : f32 to vector<8x256xf32>
    %151 = arith.maximumf %149, %150 : vector<8x256xf32>
    %cst_122 = arith.constant 0.000000e+00 : bf16
    %152 = vector.broadcast %cst_122 : bf16 to vector<8x32xbf16>
    %c0_123 = arith.constant 0 : index
    %c96_124 = arith.constant 96 : index
    %153 = vector.load %arg14[%c0_123, %c96_124] : memref<8x416xbf16, #tpu.memory_space<vmem>>, vector<8x32xbf16>
    tpu.vector_store %arg14[%c0_123, %c96_124], %152 {strides = array<i32>} : memref<8x416xbf16, #tpu.memory_space<vmem>>, vector<8x32xbf16>,
    %c0_125 = arith.constant 0 : index
    %c384_126 = arith.constant 384 : index
    %154 = vector.load %arg14[%c0_125, %c384_126] : memref<8x416xbf16, #tpu.memory_space<vmem>>, vector<8x32xbf16>
    tpu.vector_store %arg14[%c0_125, %c384_126], %152 {strides = array<i32>} : memref<8x416xbf16, #tpu.memory_space<vmem>>, vector<8x32xbf16>,
    %155 = arith.truncf %151 : vector<8x256xf32> to vector<8x256xbf16>
    %c0_127 = arith.constant 0 : index
    %c128_128 = arith.constant 128 : index
    %156 = vector.load %arg14[%c0_127, %c128_128] : memref<8x416xbf16, #tpu.memory_space<vmem>>, vector<8x256xbf16>
    tpu.vector_store %arg14[%c0_127, %c128_128], %155 {strides = array<i32>} : memref<8x416xbf16, #tpu.memory_space<vmem>>, vector<8x256xbf16>,
    %c0_129 = arith.constant 0 : index
    %c128_130 = arith.constant 128 : index
    %157 = vector.load %arg14[%c0_129, %c128_130] : memref<8x416xbf16, #tpu.memory_space<vmem>>, vector<8x256xbf16>
    %c0_131 = arith.constant 0 : index
    %c129_132 = arith.constant 129 : index
    %158 = vector.load %arg14[%c0_131, %c129_132] : memref<8x416xbf16, #tpu.memory_space<vmem>>, vector<8x256xbf16>
    %c0_133 = arith.constant 0 : index
    %c144_134 = arith.constant 144 : index
    %159 = vector.load %arg14[%c0_133, %c144_134] : memref<8x416xbf16, #tpu.memory_space<vmem>>, vector<8x256xbf16>
    %c0_135 = arith.constant 0 : index
    %c145_136 = arith.constant 145 : index
    %160 = vector.load %arg14[%c0_135, %c145_136] : memref<8x416xbf16, #tpu.memory_space<vmem>>, vector<8x256xbf16>
    %cst_137 = arith.constant 0.000000e+00 : bf16
    %161 = vector.broadcast %cst_137 : bf16 to vector<8x256xbf16>
    %162 = vector.shape_cast %20 : vector<1x256xi1> to vector<1x256xi1>
    %163 = vector.broadcast %162 : vector<1x256xi1> to vector<8x256xi1>
    %164 = arith.select %163, %158, %161 : vector<8x256xi1>, vector<8x256xbf16>
    %165 = vector.shape_cast %20 : vector<1x256xi1> to vector<1x256xi1>
    %166 = vector.broadcast %165 : vector<1x256xi1> to vector<8x256xi1>
    %167 = arith.select %166, %160, %161 : vector<8x256xi1>, vector<8x256xbf16>
    %c0_138 = arith.constant 0 : index
    %c0_139 = arith.constant 0 : index
    %168 = vector.load %arg9[%c0_138, %c0_139] : memref<4x1xf32, #tpu.memory_space<vmem>>, vector<4x1xf32>
    %c0_140 = arith.constant 0 : index
    %c0_141 = arith.constant 0 : index
    %169 = vector.load %arg10[%c0_140, %c0_141] : memref<4x1xf32, #tpu.memory_space<vmem>>, vector<4x1xf32>
    %c0_142 = arith.constant 0 : index
    %c0_143 = arith.constant 0 : index
    %c0_144 = arith.constant 0 : index
    %170 = vector.load %arg8[%c0_142, %c0_143, %c0_144] : memref<9x4x8xbf16, #tpu.memory_space<vmem>>, vector<1x4x8xbf16>
    %171 = vector.shape_cast %170 : vector<1x4x8xbf16> to vector<4x8xbf16>
    %cst_145 = arith.constant dense<0.000000e+00> : vector<4x256xf32>
    %172 = tpu.matmul %171, %157, %cst_145 {dimension_numbers = #tpu.dot_dimension_numbers<[1], [0], [0], [1], [0, 0, 1, 1], [], []>} : vector<4x8xbf16>, vector<8x256xbf16>, vector<4x256xf32> -> vector<4x256xf32>
    %173 = vector.broadcast %168 : vector<4x1xf32> to vector<4x256xf32>
    %174 = arith.mulf %172, %173 : vector<4x256xf32>
    %175 = vector.broadcast %169 : vector<4x1xf32> to vector<4x256xf32>
    %176 = arith.addf %174, %175 : vector<4x256xf32>
    %cst_146 = arith.constant 0.000000e+00 : f32
    %177 = vector.broadcast %cst_146 : f32 to vector<4x256xf32>
    %178 = arith.maximumf %176, %177 : vector<4x256xf32>
    %c0_147 = arith.constant 0 : index
    %c0_148 = arith.constant 0 : index
    %c0_149 = arith.constant 0 : index
    %c0_150 = arith.constant 0 : index
    %179 = vector.load %arg11[%c0_147, %c0_148, %c0_149, %c0_150] : memref<1x4x4x256xf32, #tpu.memory_space<vmem>>, vector<1x1x4x256xf32>
    %180 = vector.shape_cast %179 : vector<1x1x4x256xf32> to vector<4x256xf32>
    %181 = vector.shape_cast %178 : vector<4x256xf32> to vector<1x1x4x256xf32>
    tpu.vector_store %arg11[%c0_147, %c0_148, %c0_149, %c0_150], %181 {strides = array<i32>} : memref<1x4x4x256xf32, #tpu.memory_space<vmem>>, vector<1x1x4x256xf32>,
    %c1_151 = arith.constant 1 : index
    %c0_152 = arith.constant 0 : index
    %c0_153 = arith.constant 0 : index
    %182 = vector.load %arg8[%c1_151, %c0_152, %c0_153] : memref<9x4x8xbf16, #tpu.memory_space<vmem>>, vector<1x4x8xbf16>
    %183 = vector.shape_cast %182 : vector<1x4x8xbf16> to vector<4x8xbf16>
    %cst_154 = arith.constant dense<0.000000e+00> : vector<4x256xf32>
    %184 = tpu.matmul %183, %157, %cst_154 {dimension_numbers = #tpu.dot_dimension_numbers<[1], [0], [0], [1], [0, 0, 1, 1], [], []>} : vector<4x8xbf16>, vector<8x256xbf16>, vector<4x256xf32> -> vector<4x256xf32>
    %c2_155 = arith.constant 2 : index
    %c0_156 = arith.constant 0 : index
    %c0_157 = arith.constant 0 : index
    %185 = vector.load %arg8[%c2_155, %c0_156, %c0_157] : memref<9x4x8xbf16, #tpu.memory_space<vmem>>, vector<1x4x8xbf16>
    %186 = vector.shape_cast %185 : vector<1x4x8xbf16> to vector<4x8xbf16>
    %cst_158 = arith.constant dense<0.000000e+00> : vector<4x256xf32>
    %187 = tpu.matmul %186, %164, %cst_158 {dimension_numbers = #tpu.dot_dimension_numbers<[1], [0], [0], [1], [0, 0, 1, 1], [], []>} : vector<4x8xbf16>, vector<8x256xbf16>, vector<4x256xf32> -> vector<4x256xf32>
    %188 = arith.addf %184, %187 : vector<4x256xf32>
    %189 = vector.broadcast %168 : vector<4x1xf32> to vector<4x256xf32>
    %190 = arith.mulf %188, %189 : vector<4x256xf32>
    %191 = vector.broadcast %169 : vector<4x1xf32> to vector<4x256xf32>
    %192 = arith.addf %190, %191 : vector<4x256xf32>
    %cst_159 = arith.constant 0.000000e+00 : f32
    %193 = vector.broadcast %cst_159 : f32 to vector<4x256xf32>
    %194 = arith.maximumf %192, %193 : vector<4x256xf32>
    %c0_160 = arith.constant 0 : index
    %c1_161 = arith.constant 1 : index
    %c0_162 = arith.constant 0 : index
    %c0_163 = arith.constant 0 : index
    %195 = vector.load %arg11[%c0_160, %c1_161, %c0_162, %c0_163] : memref<1x4x4x256xf32, #tpu.memory_space<vmem>>, vector<1x1x4x256xf32>
    %196 = vector.shape_cast %195 : vector<1x1x4x256xf32> to vector<4x256xf32>
    %197 = vector.shape_cast %194 : vector<4x256xf32> to vector<1x1x4x256xf32>
    tpu.vector_store %arg11[%c0_160, %c1_161, %c0_162, %c0_163], %197 {strides = array<i32>} : memref<1x4x4x256xf32, #tpu.memory_space<vmem>>, vector<1x1x4x256xf32>,
    %c3_164 = arith.constant 3 : index
    %c0_165 = arith.constant 0 : index
    %c0_166 = arith.constant 0 : index
    %198 = vector.load %arg8[%c3_164, %c0_165, %c0_166] : memref<9x4x8xbf16, #tpu.memory_space<vmem>>, vector<1x4x8xbf16>
    %199 = vector.shape_cast %198 : vector<1x4x8xbf16> to vector<4x8xbf16>
    %cst_167 = arith.constant dense<0.000000e+00> : vector<4x256xf32>
    %200 = tpu.matmul %199, %157, %cst_167 {dimension_numbers = #tpu.dot_dimension_numbers<[1], [0], [0], [1], [0, 0, 1, 1], [], []>} : vector<4x8xbf16>, vector<8x256xbf16>, vector<4x256xf32> -> vector<4x256xf32>
    %c4_168 = arith.constant 4 : index
    %c0_169 = arith.constant 0 : index
    %c0_170 = arith.constant 0 : index
    %201 = vector.load %arg8[%c4_168, %c0_169, %c0_170] : memref<9x4x8xbf16, #tpu.memory_space<vmem>>, vector<1x4x8xbf16>
    %202 = vector.shape_cast %201 : vector<1x4x8xbf16> to vector<4x8xbf16>
    %cst_171 = arith.constant dense<0.000000e+00> : vector<4x256xf32>
    %203 = tpu.matmul %202, %159, %cst_171 {dimension_numbers = #tpu.dot_dimension_numbers<[1], [0], [0], [1], [0, 0, 1, 1], [], []>} : vector<4x8xbf16>, vector<8x256xbf16>, vector<4x256xf32> -> vector<4x256xf32>
    %204 = arith.addf %200, %203 : vector<4x256xf32>
    %205 = vector.broadcast %168 : vector<4x1xf32> to vector<4x256xf32>
    %206 = arith.mulf %204, %205 : vector<4x256xf32>
    %207 = vector.broadcast %169 : vector<4x1xf32> to vector<4x256xf32>
    %208 = arith.addf %206, %207 : vector<4x256xf32>
    %cst_172 = arith.constant 0.000000e+00 : f32
    %209 = vector.broadcast %cst_172 : f32 to vector<4x256xf32>
    %210 = arith.maximumf %208, %209 : vector<4x256xf32>
    %c0_173 = arith.constant 0 : index
    %c2_174 = arith.constant 2 : index
    %c0_175 = arith.constant 0 : index
    %c0_176 = arith.constant 0 : index
    %211 = vector.load %arg11[%c0_173, %c2_174, %c0_175, %c0_176] : memref<1x4x4x256xf32, #tpu.memory_space<vmem>>, vector<1x1x4x256xf32>
    %212 = vector.shape_cast %211 : vector<1x1x4x256xf32> to vector<4x256xf32>
    %213 = vector.shape_cast %210 : vector<4x256xf32> to vector<1x1x4x256xf32>
    tpu.vector_store %arg11[%c0_173, %c2_174, %c0_175, %c0_176], %213 {strides = array<i32>} : memref<1x4x4x256xf32, #tpu.memory_space<vmem>>, vector<1x1x4x256xf32>,
    %c5_177 = arith.constant 5 : index
    %c0_178 = arith.constant 0 : index
    %c0_179 = arith.constant 0 : index
    %214 = vector.load %arg8[%c5_177, %c0_178, %c0_179] : memref<9x4x8xbf16, #tpu.memory_space<vmem>>, vector<1x4x8xbf16>
    %215 = vector.shape_cast %214 : vector<1x4x8xbf16> to vector<4x8xbf16>
    %cst_180 = arith.constant dense<0.000000e+00> : vector<4x256xf32>
    %216 = tpu.matmul %215, %157, %cst_180 {dimension_numbers = #tpu.dot_dimension_numbers<[1], [0], [0], [1], [0, 0, 1, 1], [], []>} : vector<4x8xbf16>, vector<8x256xbf16>, vector<4x256xf32> -> vector<4x256xf32>
    %c6_181 = arith.constant 6 : index
    %c0_182 = arith.constant 0 : index
    %c0_183 = arith.constant 0 : index
    %217 = vector.load %arg8[%c6_181, %c0_182, %c0_183] : memref<9x4x8xbf16, #tpu.memory_space<vmem>>, vector<1x4x8xbf16>
    %218 = vector.shape_cast %217 : vector<1x4x8xbf16> to vector<4x8xbf16>
    %cst_184 = arith.constant dense<0.000000e+00> : vector<4x256xf32>
    %219 = tpu.matmul %218, %164, %cst_184 {dimension_numbers = #tpu.dot_dimension_numbers<[1], [0], [0], [1], [0, 0, 1, 1], [], []>} : vector<4x8xbf16>, vector<8x256xbf16>, vector<4x256xf32> -> vector<4x256xf32>
    %220 = arith.addf %216, %219 : vector<4x256xf32>
    %c7_185 = arith.constant 7 : index
    %c0_186 = arith.constant 0 : index
    %c0_187 = arith.constant 0 : index
    %221 = vector.load %arg8[%c7_185, %c0_186, %c0_187] : memref<9x4x8xbf16, #tpu.memory_space<vmem>>, vector<1x4x8xbf16>
    %222 = vector.shape_cast %221 : vector<1x4x8xbf16> to vector<4x8xbf16>
    %cst_188 = arith.constant dense<0.000000e+00> : vector<4x256xf32>
    %223 = tpu.matmul %222, %159, %cst_188 {dimension_numbers = #tpu.dot_dimension_numbers<[1], [0], [0], [1], [0, 0, 1, 1], [], []>} : vector<4x8xbf16>, vector<8x256xbf16>, vector<4x256xf32> -> vector<4x256xf32>
    %224 = arith.addf %220, %223 : vector<4x256xf32>
    %c8_189 = arith.constant 8 : index
    %c0_190 = arith.constant 0 : index
    %c0_191 = arith.constant 0 : index
    %225 = vector.load %arg8[%c8_189, %c0_190, %c0_191] : memref<9x4x8xbf16, #tpu.memory_space<vmem>>, vector<1x4x8xbf16>
    %226 = vector.shape_cast %225 : vector<1x4x8xbf16> to vector<4x8xbf16>
    %cst_192 = arith.constant dense<0.000000e+00> : vector<4x256xf32>
    %227 = tpu.matmul %226, %167, %cst_192 {dimension_numbers = #tpu.dot_dimension_numbers<[1], [0], [0], [1], [0, 0, 1, 1], [], []>} : vector<4x8xbf16>, vector<8x256xbf16>, vector<4x256xf32> -> vector<4x256xf32>
    %228 = arith.addf %224, %227 : vector<4x256xf32>
    %229 = vector.broadcast %168 : vector<4x1xf32> to vector<4x256xf32>
    %230 = arith.mulf %228, %229 : vector<4x256xf32>
    %231 = vector.broadcast %169 : vector<4x1xf32> to vector<4x256xf32>
    %232 = arith.addf %230, %231 : vector<4x256xf32>
    %cst_193 = arith.constant 0.000000e+00 : f32
    %233 = vector.broadcast %cst_193 : f32 to vector<4x256xf32>
    %234 = arith.maximumf %232, %233 : vector<4x256xf32>
    %c0_194 = arith.constant 0 : index
    %c3_195 = arith.constant 3 : index
    %c0_196 = arith.constant 0 : index
    %c0_197 = arith.constant 0 : index
    %235 = vector.load %arg11[%c0_194, %c3_195, %c0_196, %c0_197] : memref<1x4x4x256xf32, #tpu.memory_space<vmem>>, vector<1x1x4x256xf32>
    %236 = vector.shape_cast %235 : vector<1x1x4x256xf32> to vector<4x256xf32>
    %237 = vector.shape_cast %234 : vector<4x256xf32> to vector<1x1x4x256xf32>
    tpu.vector_store %arg11[%c0_194, %c3_195, %c0_196, %c0_197], %237 {strides = array<i32>} : memref<1x4x4x256xf32, #tpu.memory_space<vmem>>, vector<1x1x4x256xf32>,
    return
  }
  func.func @transform_0(%arg0: i32) -> (i32, i32, i32) {
    %c0_i32 = arith.constant 0 : i32
    %c0_i32_0 = arith.constant 0 : i32
    %c0_i32_1 = arith.constant 0 : i32
    return %arg0, %c0_i32, %c0_i32_0 : i32, i32, i32
  }
  func.func @transform_1(%arg0: i32) -> (i32, i32, i32) {
    %c0_i32 = arith.constant 0 : i32
    %c0_i32_0 = arith.constant 0 : i32
    %c0_i32_1 = arith.constant 0 : i32
    %c0_i32_2 = arith.constant 0 : i32
    return %c0_i32, %c0_i32_0, %c0_i32_1 : i32, i32, i32
  }
  func.func @transform_2(%arg0: i32) -> (i32, i32) {
    %c0_i32 = arith.constant 0 : i32
    %c0_i32_0 = arith.constant 0 : i32
    %c0_i32_1 = arith.constant 0 : i32
    return %c0_i32, %c0_i32_0 : i32, i32
  }
  func.func @transform_3(%arg0: i32) -> (i32, i32) {
    %c0_i32 = arith.constant 0 : i32
    %c0_i32_0 = arith.constant 0 : i32
    %c0_i32_1 = arith.constant 0 : i32
    return %c0_i32, %c0_i32_0 : i32, i32
  }
  func.func @transform_4(%arg0: i32) -> (i32, i32, i32) {
    %c0_i32 = arith.constant 0 : i32
    %c0_i32_0 = arith.constant 0 : i32
    %c0_i32_1 = arith.constant 0 : i32
    %c0_i32_2 = arith.constant 0 : i32
    return %c0_i32, %c0_i32_0, %c0_i32_1 : i32, i32, i32
  }
  func.func @transform_5(%arg0: i32) -> (i32, i32) {
    %c0_i32 = arith.constant 0 : i32
    %c0_i32_0 = arith.constant 0 : i32
    %c0_i32_1 = arith.constant 0 : i32
    return %c0_i32, %c0_i32_0 : i32, i32
  }
  func.func @transform_6(%arg0: i32) -> (i32, i32) {
    %c0_i32 = arith.constant 0 : i32
    %c0_i32_0 = arith.constant 0 : i32
    %c0_i32_1 = arith.constant 0 : i32
    return %c0_i32, %c0_i32_0 : i32, i32
  }
  func.func @transform_7(%arg0: i32) -> (i32, i32, i32) {
    %c0_i32 = arith.constant 0 : i32
    %c0_i32_0 = arith.constant 0 : i32
    %c0_i32_1 = arith.constant 0 : i32
    %c0_i32_2 = arith.constant 0 : i32
    return %c0_i32, %c0_i32_0, %c0_i32_1 : i32, i32, i32
  }
  func.func @transform_8(%arg0: i32) -> (i32, i32) {
    %c0_i32 = arith.constant 0 : i32
    %c0_i32_0 = arith.constant 0 : i32
    %c0_i32_1 = arith.constant 0 : i32
    return %c0_i32, %c0_i32_0 : i32, i32
  }
  func.func @transform_9(%arg0: i32) -> (i32, i32) {
    %c0_i32 = arith.constant 0 : i32
    %c0_i32_0 = arith.constant 0 : i32
    %c0_i32_1 = arith.constant 0 : i32
    return %c0_i32, %c0_i32_0 : i32, i32
  }
  func.func @transform_10(%arg0: i32) -> (i32, i32, i32, i32) {
    %c0_i32 = arith.constant 0 : i32
    %c0_i32_0 = arith.constant 0 : i32
    %c0_i32_1 = arith.constant 0 : i32
    %c0_i32_2 = arith.constant 0 : i32
    return %arg0, %c0_i32, %c0_i32_0, %c0_i32_1 : i32, i32, i32, i32
  }
}

</mosaic_0001>

<bundles_post_ra>
// kernel: upsample_layer_forward.1
= control target key start
LH: loop header
LB: loop body
LE: loop exit
PB: predicated region body
PF: predicated region fallthrough
CT: control target
= control target key end

     0   :  { %s2629_s13 = smov 0   ;;  %s3032_s0 = inlined_call_operand.vmem [shape: bf16[2,4,256], index: 0, kind: input, shape index: {}]   ;;  %s3033_s1 = inlined_call_operand.vmem [shape: bf16[9,8,4], index: 1, kind: input, shape index: {}]   ;;  %s3034_s2 = inlined_call_operand.vmem [shape: f32[8,1], index: 2, kind: input, shape index: {}]   ;;  %s3035_s3 = inlined_call_operand.vmem [shape: f32[8,1], index: 3, kind: input, shape index: {}]   ;;  %s3036_s4 = inlined_call_operand.vmem [shape: bf16[9,8,8], index: 4, kind: input, shape index: {}]   ;;  %s3037_s5 = inlined_call_operand.vmem [shape: f32[8,1], index: 5, kind: input, shape index: {}]   ;;  %s3038_s6 = inlined_call_operand.vmem [shape: f32[8,1], index: 6, kind: input, shape index: {}]   ;;  %s3039_s7 = inlined_call_operand.vmem [shape: bf16[9,4,8], index: 7, kind: input, shape index: {}]   ;;  %s3040_s8 = inlined_call_operand.vmem [shape: f32[4,1], index: 8, kind: input, shape index: {}]   ;;  %s3041_s9 = inlined_call_operand.vmem [shape: f32[4,1], index: 9, kind: input, shape index: {}]   ;;  %s3042_s10 = inlined_call_operand.vmem [shape: f32[2,4,4,256], index: 10, kind: output, shape index: {}]  }
   0x1 LB: > { %s2355_s14 = sadd.s32 4294967295, %s2562_s13   ;;  %p2359_p0 = scmp.ge.s32.totalorder %s2562_s13, 1  ;;  %s2562_s13 = sphi %s2629_s13, %s20_s13  }
   0x2   : > { %p312_p1 = scmp.lt.s32.totalorder %s2562_s13, 3 }
   0x4   : > { %p313_p2 = pnand %p2359_p0, %p312_p1 }
   0x5   : > { %p350_p3 = scmp.lt.s32.totalorder (!%p313_p2), %s2355_s14, 1  ;;  %vm394_vm0 = vcmask (!%p313_p2), 1042176   ;;  %v2564_v0 = vmov (!%p313_p2), 0   ;;  %vm396_vm1 = vcmask (!%p313_p2), 254976   ;;  %v363_v1 = vlaneseq (!%p313_p2)  ;;  %s2566_s19 = smov (!%p313_p2), 17   ;;  %v1099_v43 = vld [vmem:[%s3034_s2] sm:$0xff] (!%p313_p2) }
   0x6   : > { %316 = sbr.rel (%p313_p2) target bundleno = 1246 (0x4de), region = 60  ;;  %395 = vst.msk [vmem:[#allocation2] sm:$0x3] (!%p313_p2), %vm394_vm0, %v2564_v0  ;;  %532 = vmatprep.mubr.bf16.mxu0 (!%p313_p2), %v2564_v0  ;;  %473 = vmatprep.mubr.bf16.mxu1 (!%p313_p2), %v2564_v0  ;;  %v2565_v2 = vmov (!%p313_p2), 1983009808   ;;  %s2567_s20 = smov (!%p313_p2), 113  }
   0x7   : > { %397 = vst.msk [vmem:[#allocation2 + $0x6] sm:$0x3] (!%p313_p2), %vm396_vm1, %v2564_v0  ;;  %2539 = vset.pattern.permute.xlu0 (!%p313_p2), %v2564_v0  ;;  %2540 = vset.pattern.permute.xlu1 (!%p313_p2), %v2564_v0  ;;  %v407_v3 = vunpack.c.l.s4 (!%p313_p2), %v2565_v2  ;;  %v410_v6 = vshrl.u32 (!%p313_p2), %v363_v1, 7  ;;  %s2568_s21 = smov (!%p313_p2), 1   ;;  %s2569_s22 = smov (!%p313_p2), 127   ;;  %v1107_v44 = vld [vmem:[%s3035_s3] sm:$0xff] (!%p313_p2) }
   0x8   : > { %s2570_s23 = smov (!%p313_p2), 15   ;;  %s2571_s24 = smov (!%p313_p2), 16   ;;  %vm488_vm2 = vcmask (!%p313_p2), 138240   ;;  %vm434_vm3 = vcmask (!%p313_p2), 1041408   ;;  %v401_v52 = vld [vmem:[%s3033_s1] sm:$0xf] (!%p313_p2) }
   0x9   : > { %v408_v5 = vunpack.c.0.s8 (!%p313_p2), %v407_v3  ;;  %s2572_s25 = smov (!%p313_p2), 112   ;;  %s2573_s26 = smov (!%p313_p2), 111   ;;  %vm430_vm4 = vcmask (!%p313_p2), 31744   ;;  %vm567_vm5 = vcmask (!%p313_p2), 924672   ;;  %vm427_vm6 = vcmask (!%p313_p2), 7168  }
   0xa   : > { %vm881_vm7 = vcmask (!%p313_p2), 1039360   ;;  %vm957_vm8 = vcmask (!%p313_p2), 121856   ;;  %vm716_vm9 = vcmask (!%p313_p2), 130048   ;;  %vm795_vm10 = vcmask (!%p313_p2), 916480  }
   0xb   : > { %v2650_v7 = vsub.s32 (!%p313_p2), %v408_v5, %v410_v6  ;;  %vm1036_vm11 = vcmask (!%p313_p2), 908288   ;;  %vm1117_vm12 = vcmask (!%p313_p2), 1044224   ;;  %vm1119_vm13 = vcmask (!%p313_p2), 257024  }
   0xc   : > { %1118 = vst.msk [vmem:[#allocation3] sm:$0xf] (!%p313_p2), %vm1117_vm12, %v2564_v0 }
   0xd   : > { %s3052_s14 = smov (!%p350_p3, %s2355_s14), 1  ;;  %1120 = vst.msk [vmem:[#allocation3 + $0xc] sm:$0xf] %vm1119_vm13, %v2564_v0  ;;  %1722 = vst.msk [vmem:[#allocation4 + $0xc] sm:$0xf] %vm1119_vm13, %v2564_v0 }
   0xe   : > { %s2467_s15 = sshll.u32 %s3052_s14, 2 }
   0xf   : > { %s354_s18 = scalar_lea.vmem %s3032_s0, %s2467_s15 }
  0x10   : > { %v398_v4 = vld [vmem:[%s354_s18] sm:$0xf] }
  0x11   : > { %399 = vst [vmem:[#allocation2 + $0x2] sm:$0xf] %v398_v4  ;;  %v2369_v4 = vld [vmem:[%s3033_s1 + $0x18] sm:$0xf] }
  0x18   : > { %v400_v8 = vld [vmem:[#allocation2] sm:$0x3f] }
  0x19   : > { %v412_v9 = vrot.slane %v400_v8, %v2650_v7  ;;  %v405_v10 = vcombine.high %v400_v8, %v400_v8  ;;  %v541_v11 = vld [vmem:[#allocation2 + $0x2] sm:$0x3f]  ;;  %v2364_v8 = vld [vmem:[%s3033_s1 + $0xc] sm:$0xf] }
  0x1a   : > { %v552_v14 = vrot.slane %v541_v11, %v2650_v7  ;;  %v855_v15 = vld [vmem:[#allocation2 + $0x2] sm:$0x3f]  ;;  %v545_v17 = vcombine.high %v541_v11, %v541_v11 }
  0x1b   : > { %482 = vrot.lane.b32.xlu0 %v412_v9, %s2566_s19  ;;  %v419_v12 = vrot.slane %v405_v10, %v2650_v7  ;;  %v420_v13 = vcombine.high %v412_v9, %v412_v9  ;;  %v866_v16 = vrot.slane %v855_v15, %v2650_v7  ;;  %v859_v20 = vcombine.high %v855_v15, %v855_v15  ;;  %v852_v21 = vld [vmem:[#allocation2] sm:$0x3f] }
  0x1c   : > { %v560_v18 = vcombine.high %v552_v14, %v552_v14  ;;  %v559_v19 = vrot.slane %v545_v17, %v2650_v7  ;;  %v942_v24 = vrot.slane %v852_v21, %v2650_v7  ;;  %v935_v25 = vcombine.high %v852_v21, %v852_v21  ;;  %v628_v26 = vld [vmem:[#allocation2] sm:$0x3f] }
  0x1d   : > { %486 = vrot.lane.b32.xlu1 %v419_v12, %s2566_s19  ;;  %v874_v22 = vcombine.high %v866_v16, %v866_v16  ;;  %v873_v23 = vrot.slane %v859_v20, %v2650_v7  ;;  %v701_v29 = vrot.slane %v628_v26, %v2650_v7  ;;  %v694_v30 = vcombine.high %v628_v26, %v628_v26  ;;  %v769_v31 = vld [vmem:[#allocation2 + $0x2] sm:$0x3f]  ;;  %v2373_v20 = vld [vmem:[%s3033_s1 + $0x10] sm:$0xf] }
  0x1e   : > { %v950_v27 = vcombine.high %v942_v24, %v942_v24  ;;  %v949_v28 = vrot.slane %v935_v25, %v2650_v7  ;;  %v780_v34 = vrot.slane %v769_v31, %v2650_v7  ;;  %v773_v35 = vcombine.high %v769_v31, %v769_v31  ;;  %v1010_v36 = vld [vmem:[#allocation2 + $0x2] sm:$0x3f]  ;;  %v2382_v31 = vld [vmem:[%s3033_s1 + $0x8] sm:$0xf] }
  0x1f   : > { %484 = vrot.lane.b32.xlu0 %v420_v13, %s2566_s19  ;;  %v709_v32 = vcombine.high %v701_v29, %v701_v29  ;;  %v708_v33 = vrot.slane %v694_v30, %v2650_v7  ;;  %v1021_v39 = vrot.slane %v1010_v36, %v2650_v7  ;;  %v1014_v40 = vcombine.high %v1010_v36, %v1010_v36  ;;  %v2374_v59 = vld.sshfl [vmem:[#allocation2 + $0x2] sm:$0x33 pattern:$0x76325410] }
  0x20   : > { %v788_v37 = vcombine.high %v780_v34, %v780_v34  ;;  %v787_v38 = vrot.slane %v773_v35, %v2650_v7  ;;  %v642_v63 = vcombine.high %v2374_v59, %v2374_v59  ;;  %v647_v10 = vsel %vm434_vm3, %v2374_v59, 0 }
  0x21   : > { %561 = vrot.lane.b32.xlu1 %v552_v14, %s2567_s20  ;;  %v1029_v41 = vcombine.high %v1021_v39, %v1021_v39  ;;  %v1028_v42 = vrot.slane %v1014_v40, %v2650_v7 }
  0x23   : > { %421 = vrot.lane.b32.xlu0 %v412_v9, %s2568_s21 }
  0x25   : > { %875 = vrot.lane.b32.xlu1 %v866_v16, %s2569_s22  ;;  %v2383_v16 = vld [vmem:[%s3033_s1 + $0x14] sm:$0xf] }
  0x27   : > { %563 = vrot.lane.b32.xlu0 %v560_v18, %s2567_s20 }
  0x29   : > { %565 = vrot.lane.b32.xlu1 %v559_v19, %s2567_s20 }
  0x2b   : > { %425 = vrot.lane.b32.xlu0 %v419_v12, %s2568_s21 }
  0x2d   : > { %423 = vrot.lane.b32.xlu1 %v420_v13, %s2568_s21 }
  0x2f   : > { %877 = vrot.lane.b32.xlu0 %v874_v22, %s2569_s22 }
  0x31   : > { %879 = vrot.lane.b32.xlu1 %v873_v23, %s2569_s22 }
  0x33   : > { %951 = vrot.lane.b32.xlu0 %v942_v24, %s2570_s23 }
  0x35   : > { %953 = vrot.lane.b32.xlu1 %v950_v27, %s2570_s23 }
  0x37   : > { %955 = vrot.lane.b32.xlu0 %v949_v28, %s2570_s23  ;;  %v2372_v28 = vld [vmem:[%s3033_s1 + $0x4] sm:$0xf] }
  0x39   : > { %710 = vrot.lane.b32.xlu1 %v701_v29, %s2571_s24 }
  0x3b   : > { %712 = vrot.lane.b32.xlu0 %v709_v32, %s2571_s24 }
  0x3d   : > { %714 = vrot.lane.b32.xlu1 %v708_v33, %s2571_s24 }
  0x3f   : > { %789 = vrot.lane.b32.xlu0 %v780_v34, %s2572_s25 }
  0x41   : > { %791 = vrot.lane.b32.xlu1 %v788_v37, %s2572_s25 }
  0x43   : > { %793 = vrot.lane.b32.xlu0 %v787_v38, %s2572_s25  ;;  %v2379_v38 = vld [vmem:[%s3033_s1 + $0x1c] sm:$0xf] }
  0x45   : > { %1030 = vrot.lane.b32.xlu1 %v1021_v39, %s2573_s26 }
  0x47   : > { %1032 = vrot.lane.b32.xlu0 %v1029_v41, %s2573_s26 }
  0x49   : > { %1034 = vrot.lane.b32.xlu1 %v1028_v42, %s2573_s26  ;;  %v2388_v42 = vld [vmem:[%s3033_s1 + $0x20] sm:$0xf] }
  0x4b   : > { %1102 = vperm.xlu0 %2539, %v1099_v43  }
  0x4d   : > { %1110 = vperm.xlu1 %2540, %v1107_v44  }
  0x8d   : > { %v483_v45 = vpop.permute.xlu0 %482 }
  0x8f   : > { %v487_v46 = vpop.permute.xlu1 %486 }
  0x91   : > { %v485_v47 = vpop.permute.xlu0 %484 }
  0x92   : > { %v490_v48 = vsel %vm488_vm2, %v485_v47, %v487_v46  ;;  %v489_v49 = vsel %vm488_vm2, %v483_v45, %v485_v47 }
  0x93   : > { %2367 = vmatprep.subr.msk.bf16.mxu0 %vm434_vm3, %v490_v48  ;;  %v562_v50 = vpop.permute.xlu1 %561  ;;  %v495_v51 = vsel %vm434_vm3, %v489_v49, 0 }
  0x94   : > { %501 = vmatpush1.bf16.msra.mxu0 %v495_v51 }
  0x95   : > { %v422_v53 = vpop.permute.xlu0 %421 }
  0x97   : > { %2368 = vmatmul.mubr.msk.bf16.vlgmr.msra.gmra.mrb[0].mxu0 %vm430_vm4, %v401_v52  ;;  %v876_v54 = vpop.permute.xlu1 %875 }
  0x98   : > { %611 = vmatprep.mubr.bf16.mxu0 %v2564_v0 }
  0x99   : > { %v564_v55 = vpop.permute.xlu0 %563 }
  0x9a   : > { %v568_v56 = vsel %vm567_vm5, %v562_v50, %v564_v55 }
  0x9b   : > { %v566_v57 = vpop.permute.xlu1 %565  ;;  %v574_v60 = vsel %vm434_vm3, %v568_v56, 0 }
  0x9c   : > { %v569_v58 = vsel %vm567_vm5, %v564_v55, %v566_v57  ;;  %v364_v57 = vand.u32 127, %v363_v1 }
  0x9d   : > { %v426_v61 = vpop.permute.xlu0 %425  ;;  %2370 = vmatprep.subr.msk.bf16.mxu0 %vm434_vm3, %v569_v58 }
  0x9e   : > { %580 = vmatpush1.bf16.msra.mxu0 %v574_v60  ;;  %v365_v58 = vadd.s32 128, %v364_v57 }
  0x9f   : > { %v424_v62 = vpop.permute.xlu1 %423 }
  0xa0   : > { %v429_v2 = vsel %vm427_vm6, %v424_v62, %v426_v61  ;;  %v428_v3 = vsel %vm427_vm6, %v422_v53, %v424_v62 }
  0xa1   : > { %v878_v5 = vpop.permute.xlu0 %877  ;;  %2365 = vmatprep.subr.msk.bf16.mxu1 %vm434_vm3, %v429_v2  ;;  %v436_v6 = vsel %vm434_vm3, %v428_v3, 0  ;;  %v370_v2 = vand.u32 15, %v364_v57 }
  0xa2   : > { %v882_v7 = vsel %vm881_vm7, %v876_v54, %v878_v5  ;;  %442 = vmatpush1.bf16.msra.mxu1 %v436_v6 }
  0xa3   : > { %2371 = vmatmul.mubr.msk.bf16.vlgmr.msra.gmra.mrb[0].mxu0 %vm430_vm4, %v2369_v4  ;;  %v880_v9 = vpop.permute.xlu1 %879  ;;  %2375 = vmatprep.subr.msk.bf16.mxu1 %vm434_vm3, %v642_v63  ;;  %v888_v12 = vsel %vm434_vm3, %v882_v7, 0  ;;  %v377_v4 = vand.u32 15, %v365_v58  ;;  %vm2779_vm14 = vcmp.ne.s32.totalorder %v370_v2, 0  ;;  %vm2791_vm0 = vcmp.ne.s32.totalorder %v370_v2, 15 }
  0xa4   : > { %v883_v11 = vsel %vm881_vm7, %v878_v5, %v880_v9  ;;  %925 = vmatprep.mubr.bf16.mxu0 %v2564_v0 }
  0xa5   : > { %v952_v13 = vpop.permute.xlu0 %951  ;;  %2366 = vmatmul.mubr.msk.bf16.vlgmr.msra.gmra.mrb[0].mxu1 %vm430_vm4, %v2364_v8  ;;  %2384 = vmatprep.subr.msk.bf16.mxu0 %vm434_vm3, %v883_v11  ;;  %vm2783_vm15 = vcmp.ne.s32.totalorder %v377_v4, 0  ;;  %vm2795_vm1 = vcmp.ne.s32.totalorder %v377_v4, 15  ;;  %v1132_v4 = vld [vmem:[%s3036_s4] sm:$0xf] }
  0xa6   : > { %894 = vmatpush1.bf16.msra.mxu0 %v888_v12  ;;  %653 = vmatpush1.bf16.msra.mxu1 %v647_v10  ;;  %vm1734_vm12 = vmpackc.low %vm2795_vm1, %vm2791_vm0 }
  0xa7   : > { %v954_v14 = vpop.permute.xlu1 %953  ;;  %684 = vmatprep.mubr.bf16.mxu1 %v2564_v0 }
  0xa8   : > { %v958_v15 = vsel %vm957_vm8, %v952_v13, %v954_v14 }
  0xa9   : > { %v964_v17 = vsel %vm434_vm3, %v958_v15, 0  ;;  %v956_v18 = vpop.permute.xlu0 %955 }
  0xaa   : > { %v959_v19 = vsel %vm957_vm8, %v954_v14, %v956_v18 }
  0xab   : > { %2385 = vmatmul.mubr.msk.bf16.vlgmr.msra.gmra.mrb[4].mxu0 %vm430_vm4, %v2383_v16  ;;  %2386 = vmatprep.subr.msk.bf16.mxu0 %vm434_vm3, %v959_v19  ;;  %v711_v21 = vpop.permute.xlu1 %710 }
  0xac   : > { %970 = vmatpush1.bf16.msra.mxu0 %v964_v17  ;;  %1001 = vmatprep.mubr.bf16.mxu0 %v2564_v0 }
  0xad   : > { %v713_v22 = vpop.permute.xlu0 %712  ;;  %2376 = vmatmul.mubr.msk.bf16.vlgmr.msra.gmra.mrb[4].mxu1 %vm430_vm4, %v2373_v20 }
  0xae   : > { %v717_v23 = vsel %vm716_vm9, %v711_v21, %v713_v22  ;;  %760 = vmatprep.mubr.bf16.mxu1 %v2564_v0 }
  0xaf   : > { %v715_v24 = vpop.permute.xlu1 %714  ;;  %v723_v26 = vsel %vm434_vm3, %v717_v23, 0 }
  0xb0   : > { %v718_v25 = vsel %vm716_vm9, %v713_v22, %v715_v24 }
  0xb1   : > { %v790_v27 = vpop.permute.xlu0 %789  ;;  %2377 = vmatprep.subr.msk.bf16.mxu1 %vm434_vm3, %v718_v25 }
  0xb2   : > { %729 = vmatpush1.bf16.msra.mxu1 %v723_v26 }
  0xb3   : > { %v792_v29 = vpop.permute.xlu1 %791 }
  0xb4   : > { %v796_v30 = vsel %vm795_vm10, %v790_v27, %v792_v29 }
  0xb5   : > { %v802_v32 = vsel %vm434_vm3, %v796_v30, 0  ;;  %v794_v33 = vpop.permute.xlu0 %793  ;;  %2378 = vmatmul.mubr.msk.bf16.vlgmr.msra.gmra.mrb[8].mxu1 %vm430_vm4, %v2372_v28 }
  0xb6   : > { %v797_v34 = vsel %vm795_vm10, %v792_v29, %v794_v33  ;;  %839 = vmatprep.mubr.bf16.mxu1 %v2564_v0 }
  0xb7   : > { %2380 = vmatprep.subr.msk.bf16.mxu1 %vm434_vm3, %v797_v34  ;;  %2387 = vmatmul.mubr.msk.bf16.vlgmr.msra.gmra.mrb[4].mxu0 %vm430_vm4, %v2382_v31  ;;  %v1031_v35 = vpop.permute.xlu1 %1030 }
  0xb8   : > { %808 = vmatpush1.bf16.msra.mxu1 %v802_v32  ;;  %1080 = vmatprep.mubr.bf16.mxu0 %v2564_v0 }
  0xb9   : > { %v1033_v36 = vpop.permute.xlu0 %1032 }
  0xba   : > { %v1037_v37 = vsel %vm1036_vm11, %v1031_v35, %v1033_v36 }
  0xbb   : > { %v1035_v39 = vpop.permute.xlu1 %1034  ;;  %v1043_v41 = vsel %vm434_vm3, %v1037_v37, 0 }
  0xbc   : > { %v1038_v40 = vsel %vm1036_vm11, %v1033_v36, %v1035_v39 }
  0xbd   : > { %2381 = vmatmul.mubr.msk.bf16.vlgmr.msra.gmra.mrb[12].mxu1 %vm430_vm4, %v2379_v38  ;;  %2389 = vmatprep.subr.msk.bf16.mxu0 %vm434_vm3, %v1038_v40  ;;  %vm1155_vm3 = vcmask 1043456  }
  0xbe   : > { %1049 = vmatpush1.bf16.msra.mxu0 %v1043_v41  ;;  %1194 = vmatprep.mubr.bf16.mxu1 %v2564_v0 }
  0xc3   : > { %2390 = vmatmul.mubr.msk.bf16.vlgmr.msra.gmra.mrb[4].mxu0 %vm430_vm4, %v2388_v42  ;;  %v2550_v42 = vld [vmem:[#allocation3 + $0xc] ss:$0 sps:$4 sm:$0xff]   ;;  %vm1151_vm4 = vcmask 64512  }
  0xc4   : > { %1386 = vmatprep.mubr.bf16.mxu0 %v2564_v0 }
  0xca   : > { %v1103_v21 = vpop.permute.xlu0 %1102 }
  0xcc   : > { %v1111_v27 = vpop.permute.xlu1 %1110 }
 0x176   : > { %v613_v43 = vpop.f32.mrb[0].mxu0 }
 0x177   : > { %v615_v44 = vpop.f32.mrb[1].mxu0 }
 0x178   : > { %v475_v45 = vpop.f32.mrb[0].mxu1  ;;  %v617_v46 = vpop.f32.mrb[2].mxu0 }
 0x179   : > { %v2471_v47 = vadd.f32 %v613_v43, %v475_v45  ;;  %v477_v48 = vpop.f32.mrb[1].mxu1  ;;  %v618_v49 = vpop.f32.mrb[3].mxu0  ;;  %v2407_v43 = vld [vmem:[%s3036_s4 + $0x10] sm:$0xf]  ;;  %v1703_v45 = vld [vmem:[%s3037_s5] sm:$0xff]  ;;  %v1735_v46 = vsel %vm1734_vm12, 65537, %v2564_v0 }
 0x17a   : > { %v2472_v50 = vadd.f32 %v615_v44, %v477_v48  ;;  %v479_v51 = vpop.f32.mrb[2].mxu1  ;;  %v1711_v44 = vld [vmem:[%s3038_s6] sm:$0xff] }
 0x17b   : > { %v480_v52 = vpop.f32.mrb[3].mxu1  ;;  %v626_v9 = vsel %vm2779_vm14, %v2471_v47, 0.0 }
 0x17c   : > { %v627_v12 = vsel %vm2783_vm15, %v2472_v50, 0.0 }
 0x180   : > { %v686_v53 = vpop.f32.mrb[4].mxu1 }
 0x181   : > { %v688_v54 = vpop.f32.mrb[5].mxu1 }
 0x182   : > { %v690_v55 = vpop.f32.mrb[6].mxu1 }
 0x183   : > { %v691_v56 = vpop.f32.mrb[7].mxu1 }
 0x188   : > { %v762_v59 = vpop.f32.mrb[8].mxu1 }
 0x189   : > { %v763_v60 = vadd.f32 %v762_v59, %v686_v53  ;;  %v764_v61 = vpop.f32.mrb[9].mxu1 }
 0x18a   : > { %v765_v62 = vadd.f32 %v764_v61, %v688_v54  ;;  %v766_v63 = vpop.f32.mrb[10].mxu1  ;;  %v2392_v54 = vld [vmem:[%s3036_s4 + $0xc] sm:$0xf] }
 0x18b   : > { %v767_v3 = vpop.f32.mrb[11].mxu1 }
 0x190   : > { %v841_v7 = vpop.f32.mrb[12].mxu1 }
 0x191   : > { %v848_v8 = vadd.f32 %v841_v7, %v763_v60  ;;  %v843_v1 = vpop.f32.mrb[13].mxu1 }
 0x192   : > { %v849_v10 = vadd.f32 %v843_v1, %v765_v62  ;;  %v845_v11 = vpop.f32.mrb[14].mxu1 }
 0x193   : > { %v850_v13 = vadd.f32 %v848_v8, %v626_v9  ;;  %v846_v14 = vpop.f32.mrb[15].mxu1 }
 0x194   : > { %v851_v15 = vadd.f32 %v849_v10, %v627_v12 }
 0x196   : > { %v1082_v18 = vpop.f32.mrb[4].mxu0 }
 0x197   : > { %v1095_v19 = vsel %vm2791_vm0, %v1082_v18, 0.0  ;;  %v1084_v20 = vpop.f32.mrb[5].mxu0 }
 0x198   : > { %v1097_v22 = vadd.f32 %v1095_v19, %v850_v13  ;;  %v1096_v23 = vsel %vm2795_vm1, %v1084_v20, 0.0  ;;  %v1086_v24 = vpop.f32.mrb[6].mxu0 }
 0x199   : > { %v1098_v25 = vadd.f32 %v1096_v23, %v851_v15  ;;  %v1087_v26 = vpop.f32.mrb[7].mxu0  ;;  %v2400_v15 = vld [vmem:[%s3036_s4 + $0x18] sm:$0xf] }
 0x19a   : > { %v1105_v28 = vmul.f32 %v1103_v21, %v1097_v22  ;;  %v2406_v26 = vld [vmem:[%s3036_s4 + $0x4] sm:$0xf] }
 0x19b   : > { %v1106_v29 = vmul.f32 %v1103_v21, %v1098_v25 }
 0x19c   : > { %v1113_v30 = vadd.f32 %v1111_v27, %v1105_v28 }
 0x19d   : > { %v1114_v31 = vadd.f32 %v1111_v27, %v1106_v29 }
 0x19e   : > { %v1115_v32 = vmax.f32 %v1113_v30, 0.0 }
 0x19f   : > { %v1116_v33 = vmax.f32 %v1114_v31, 0.0 }
 0x1a0   : > { %v2553_v36 = vpack.c.bf16 %v1115_v32, %v1115_v32 }
 0x1a1   : > { %v2469_v34 = vpack.c.bf16 %v1116_v33, %v1115_v32  ;;  %v2552_v35 = vpack.c.bf16 %v1116_v33, %v1116_v33  ;;  %v2414_v33 = vld [vmem:[%s3036_s4 + $0x1c] sm:$0xf] }
 0x1a2   : > { %v1349_v37 = vsel %vm1155_vm3, %v2553_v36, 0 }
 0x1a3   : > { %1129 = vst [vmem:[#allocation3 + $0x4] sm:$0xff] %v2469_v34  ;;  %2410 = vmatprep.subr.msk.bf16.mxu0 %vm1155_vm3, %v2552_v35 }
 0x1a4   : > { %1355 = vmatpush1.bf16.msra.mxu0 %v1349_v37 }
 0x1a7   : > { %2411 = vmatmul.mubr.msk.bf16.vlgmr.msra.gmra.mrb[8].mxu0 %vm1151_vm4, %v2407_v43  ;;  %v2423_v43 = vld [vmem:[%s3036_s4 + $0x20] sm:$0xf] }
 0x1a8   : > { %1504 = vmatprep.mubr.bf16.mxu0 %v2564_v0 }
 0x1aa   : > { %v1130_v38 = vld [vmem:[#allocation3] sm:$0xff]  ;;  %v2549_v41 = vld [vmem:[#allocation3 + $0x8] ss:$0 sps:$4 sm:$0xff]  }
 0x1ab   : > { %v2394_v39 = vcombine.high %v1130_v38, %v1130_v38  ;;  %v2393_v40 = vcombine.low %v1130_v38, %v1130_v38 }
 0x1ad   : > { %1145 = vrot.lane.b32.xlu0 %v2394_v39, %s2568_s21  ;;  %1143 = vrot.lane.b32.xlu1 %v2393_v40, %s2568_s21 }
 0x1b1   : > { %1203 = vrot.lane.b32.xlu0 %v2393_v40, %s2566_s19  ;;  %1147 = vrot.lane.b32.xlu1 %v2549_v41, %s2568_s21 }
 0x1b5   : > { %1207 = vrot.lane.b32.xlu0 %v2549_v41, %s2566_s19  ;;  %1205 = vrot.lane.b32.xlu1 %v2394_v39, %s2566_s19 }
 0x1b9   : > { %1275 = vrot.lane.b32.xlu0 %v2552_v35, %s2567_s20  ;;  %1273 = vrot.lane.b32.xlu1 %v2553_v36, %s2567_s20 }
 0x1bd   : > { %1395 = vrot.lane.b32.xlu0 %v2393_v40, %s2571_s24  ;;  %1277 = vrot.lane.b32.xlu1 %v2550_v42, %s2567_s20 }
 0x1c1   : > { %1399 = vrot.lane.b32.xlu0 %v2549_v41, %s2571_s24  ;;  %1397 = vrot.lane.b32.xlu1 %v2394_v39, %s2571_s24 }
 0x1c5   : > { %1523 = vrot.lane.b32.xlu0 %v2552_v35, %s2569_s22  ;;  %1521 = vrot.lane.b32.xlu1 %v2553_v36, %s2569_s22 }
 0x1c9   : > { %1579 = vrot.lane.b32.xlu0 %v2393_v40, %s2570_s23  ;;  %1525 = vrot.lane.b32.xlu1 %v2550_v42, %s2569_s22 }
 0x1cd   : > { %1583 = vrot.lane.b32.xlu0 %v2549_v41, %s2570_s23  ;;  %1581 = vrot.lane.b32.xlu1 %v2394_v39, %s2570_s23  ;;  %v2417_v41 = vld [vmem:[%s3036_s4 + $0x8] sm:$0xf] }
 0x1d1   : > { %1457 = vrot.lane.b32.xlu0 %v2552_v35, %s2572_s25  ;;  %1459 = vrot.lane.b32.xlu1 %v2550_v42, %s2572_s25 }
 0x1d5   : > { %1639 = vrot.lane.b32.xlu0 %v2553_v36, %s2573_s26  ;;  %1455 = vrot.lane.b32.xlu1 %v2553_v36, %s2572_s25 }
 0x1d9   : > { %1643 = vrot.lane.b32.xlu0 %v2550_v42, %s2573_s26  ;;  %1641 = vrot.lane.b32.xlu1 %v2552_v35, %s2573_s26  ;;  %v2418_v35 = vld [vmem:[%s3036_s4 + $0x14] sm:$0xf] }
 0x1dd   : > { %1714 = vperm.xlu0 %2539, %v1711_v44   ;;  %1706 = vperm.xlu1 %2540, %v1703_v45  }
 0x1e1   : > { %1744 = vrot.lane.b32.xlu0 %v1735_v46, %s2566_s19  ;;  %1736 = vrot.lane.b32.xlu1 %v1735_v46, %s2568_s21 }
 0x21f   : > { %v1146_v47 = vpop.permute.xlu0 %1145  ;;  %v1144_v48 = vpop.permute.xlu1 %1143 }
 0x220   : > { %v1149_v49 = vsel %vm427_vm6, %v1144_v48, %v1146_v47 }
 0x221   : > { %v1157_v53 = vsel %vm1155_vm3, %v1149_v49, 0 }
 0x223   : > { %v1204_v50 = vpop.permute.xlu0 %1203  ;;  %v1148_v51 = vpop.permute.xlu1 %1147 }
 0x224   : > { %v1150_v52 = vsel %vm427_vm6, %v1146_v47, %v1148_v51 }
 0x225   : > { %2396 = vmatprep.subr.msk.bf16.mxu1 %vm1155_vm3, %v1150_v52 }
 0x226   : > { %1163 = vmatpush1.bf16.msra.mxu1 %v1157_v53 }
 0x227   : > { %v1208_v55 = vpop.permute.xlu0 %1207  ;;  %v1206_v56 = vpop.permute.xlu1 %1205 }
 0x228   : > { %v1209_v57 = vsel %vm488_vm2, %v1204_v50, %v1206_v56  ;;  %v1210_v58 = vsel %vm488_vm2, %v1206_v56, %v1208_v55 }
 0x229   : > { %v1215_v59 = vsel %vm1155_vm3, %v1209_v57, 0  ;;  %2397 = vmatmul.mubr.msk.bf16.vlgmr.msra.gmra.mrb[16].mxu1 %vm1151_vm4, %v2392_v54  ;;  %2398 = vmatprep.subr.msk.bf16.mxu1 %vm1155_vm3, %v1210_v58 }
 0x22a   : > { %1221 = vmatpush1.bf16.msra.mxu1 %v1215_v59  ;;  %1252 = vmatprep.mubr.bf16.mxu1 %v2564_v0 }
 0x22b   : > { %v1276_v60 = vpop.permute.xlu0 %1275  ;;  %v1274_v61 = vpop.permute.xlu1 %1273 }
 0x22c   : > { %v1279_v3 = vsel %vm567_vm5, %v1274_v61, %v1276_v60 }
 0x22d   : > { %v1285_v9 = vsel %vm1155_vm3, %v1279_v3, 0 }
 0x22f   : > { %v1396_v62 = vpop.permute.xlu0 %1395  ;;  %v1278_v63 = vpop.permute.xlu1 %1277 }
 0x230   : > { %v1280_v2 = vsel %vm567_vm5, %v1276_v60, %v1278_v63 }
 0x231   : > { %2404 = vmatprep.subr.msk.bf16.mxu1 %vm1155_vm3, %v1280_v2 }
 0x233   : > { %v1400_v7 = vpop.permute.xlu0 %1399  ;;  %v1398_v8 = vpop.permute.xlu1 %1397 }
 0x234   : > { %v1402_v1 = vsel %vm716_vm9, %v1398_v8, %v1400_v7  ;;  %v1401_v14 = vsel %vm716_vm9, %v1396_v62, %v1398_v8 }
 0x235   : > { %2399 = vmatmul.mubr.msk.bf16.vlgmr.msra.gmra.mrb[16].mxu1 %vm1151_vm4, %v1132_v4  ;;  %v1407_v20 = vsel %vm1155_vm3, %v1401_v14, 0 }
 0x236   : > { %1291 = vmatpush1.bf16.msra.mxu1 %v1285_v9  ;;  %1322 = vmatprep.mubr.bf16.mxu1 %v2564_v0 }
 0x237   : > { %2412 = vmatprep.subr.msk.bf16.mxu1 %vm1155_vm3, %v1402_v1  ;;  %v1524_v10 = vpop.permute.xlu0 %1523  ;;  %v1522_v11 = vpop.permute.xlu1 %1521 }
 0x238   : > { %v1527_v25 = vsel %vm881_vm7, %v1522_v11, %v1524_v10 }
 0x239   : > { %v1533_v29 = vsel %vm1155_vm3, %v1527_v25, 0 }
 0x23b   : > { %v1580_v12 = vpop.permute.xlu0 %1579  ;;  %v1526_v13 = vpop.permute.xlu1 %1525 }
 0x23c   : > { %v1528_v21 = vsel %vm881_vm7, %v1524_v10, %v1526_v13 }
 0x23f   : > { %v1584_v18 = vpop.permute.xlu0 %1583  ;;  %v1582_v19 = vpop.permute.xlu1 %1581 }
 0x240   : > { %v1586_v32 = vsel %vm957_vm8, %v1582_v19, %v1584_v18  ;;  %v1585_v34 = vsel %vm957_vm8, %v1580_v12, %v1582_v19 }
 0x241   : > { %2405 = vmatmul.mubr.msk.bf16.vlgmr.msra.gmra.mrb[16].mxu1 %vm1151_vm4, %v2400_v15  ;;  %v1591_v38 = vsel %vm1155_vm3, %v1585_v34, 0  ;;  %v1754_v34 = vld [vmem:[%s3039_s7] sm:$0x3] }
 0x242   : > { %1413 = vmatpush1.bf16.msra.mxu1 %v1407_v20  ;;  %1444 = vmatprep.mubr.bf16.mxu1 %v2564_v0 }
 0x243   : > { %2419 = vmatprep.subr.msk.bf16.mxu1 %vm1155_vm3, %v1528_v21  ;;  %v1458_v22 = vpop.permute.xlu0 %1457  ;;  %v1460_v23 = vpop.permute.xlu1 %1459 }
 0x244   : > { %v1462_v24 = vsel %vm795_vm10, %v1458_v22, %v1460_v23 }
 0x245   : > { %2415 = vmatprep.subr.msk.bf16.mxu0 %vm1155_vm3, %v1462_v24 }
 0x247   : > { %v1456_v27 = vpop.permute.xlu1 %1455  ;;  %v1640_v30 = vpop.permute.xlu0 %1639 }
 0x248   : > { %v1461_v28 = vsel %vm795_vm10, %v1456_v27, %v1458_v22 }
 0x249   : > { %v1467_v31 = vsel %vm1155_vm3, %v1461_v28, 0  ;;  %2413 = vmatmul.mubr.msk.bf16.vlgmr.msra.gmra.mrb[20].mxu1 %vm1151_vm4, %v2406_v26 }
 0x24a   : > { %1539 = vmatpush1.bf16.msra.mxu1 %v1533_v29  ;;  %1473 = vmatpush1.bf16.msra.mxu0 %v1467_v31 }
 0x24b   : > { %2421 = vmatprep.subr.msk.bf16.mxu1 %vm1155_vm3, %v1586_v32  ;;  %1570 = vmatprep.mubr.bf16.mxu1 %v2564_v0  ;;  %v1644_v36 = vpop.permute.xlu0 %1643  ;;  %v1642_v37 = vpop.permute.xlu1 %1641 }
 0x24c   : > { %v1646_v39 = vsel %vm1036_vm11, %v1642_v37, %v1644_v36  ;;  %v1645_v40 = vsel %vm1036_vm11, %v1640_v30, %v1642_v37  ;;  %v1733_v30 = vld [vmem:[#allocation4 + $0xc] sm:$0xf] }
 0x24d   : > { %2416 = vmatmul.mubr.msk.bf16.vlgmr.msra.gmra.mrb[12].mxu0 %vm1151_vm4, %v2414_v33  ;;  %v1651_v42 = vsel %vm1155_vm3, %v1645_v40, 0 }
 0x24e   : > { %1801 = vmatprep.mubr.bf16.mxu0 %v2564_v0 }
 0x251   : > { %2420 = vmatmul.mubr.msk.bf16.vlgmr.msra.gmra.mrb[24].mxu1 %vm1151_vm4, %v2418_v35 }
 0x252   : > { %1597 = vmatpush1.bf16.msra.mxu1 %v1591_v38  ;;  %1628 = vmatprep.mubr.bf16.mxu1 %v2564_v0  ;;  %v2443_v38 = vcombine.low %v1733_v30, %v1733_v30 }
 0x253   : > { %2424 = vmatprep.subr.msk.bf16.mxu1 %vm1155_vm3, %v1646_v39 }
 0x25c   : > { %v1707_v8 = vpop.permute.xlu1 %1706  ;;  %v1715_v6 = vpop.permute.xlu0 %1714 }
 0x25d   : > { %2422 = vmatmul.mubr.msk.bf16.vlgmr.msra.gmra.mrb[24].mxu1 %vm1151_vm4, %v2417_v41 }
 0x25e   : > { %1657 = vmatpush1.bf16.msra.mxu1 %v1651_v42  ;;  %1688 = vmatprep.mubr.bf16.mxu1 %v2564_v0 }
 0x260   : > { %v1737_v13 = vpop.permute.xlu1 %1736  ;;  %v1745_v25 = vpop.permute.xlu0 %1744 }
 0x261   : > { %v1738_v20 = vrot.slane %v1737_v13, 4  ;;  %v1746_v27 = vrot.slane %v1745_v25, 4 }
 0x263   : > { %v1739_v16 = vsel %vm427_vm6, %v1738_v20, %v1737_v13  ;;  %vm1741_vm8 = vcmp.ne.s16.totalorder %v1738_v20, 0  ;;  %v1747_v36 = vsel %vm488_vm2, %v1746_v27, %v1745_v25  ;;  %vm1749_vm9 = vcmp.ne.s16.totalorder %v1746_v27, 0 }
 0x264   : > { %vm1740_vm5 = vcmp.ne.s16.totalorder %v1739_v16, 0  ;;  %v1743_v35 = vsel %vm1741_vm8, %v1733_v30, 0  ;;  %vm1748_vm6 = vcmp.ne.s16.totalorder %v1747_v36, 0  ;;  %v1751_v41 = vsel %vm1749_vm9, %v1733_v30, 0 }
 0x265   : > { %v2435_v37 = vcombine.low %v1743_v35, %v1743_v35 }
 0x269   : > { %2425 = vmatmul.mubr.msk.bf16.vlgmr.msra.gmra.mrb[24].mxu1 %vm1151_vm4, %v2423_v43  ;;  %v1752_v43 = vld [vmem:[%s3040_s8] sm:$0xf] }
 0x26a   : > { %2013 = vmatprep.mubr.bf16.mxu1 %v2564_v0 }
 0x27a   : > { %v1388_v44 = vpop.f32.mrb[8].mxu0 }
 0x27b   : > { %v1390_v45 = vpop.f32.mrb[9].mxu0 }
 0x27c   : > { %v1392_v46 = vpop.f32.mrb[10].mxu0 }
 0x27d   : > { %v1393_v47 = vpop.f32.mrb[11].mxu0 }
 0x314   : > { %v1324_v48 = vpop.f32.mrb[16].mxu1 }
 0x315   : > { %v1326_v49 = vpop.f32.mrb[17].mxu1  ;;  %v1333_v61 = vsel %vm2779_vm14, %v1324_v48, 0.0 }
 0x316   : > { %v1328_v50 = vpop.f32.mrb[18].mxu1  ;;  %v1334_v2 = vsel %vm2783_vm15, %v1326_v49, 0.0 }
 0x317   : > { %v1329_v51 = vpop.f32.mrb[19].mxu1 }
 0x31c   : > { %v1446_v52 = vpop.f32.mrb[20].mxu1 }
 0x31d   : > { %v1447_v53 = vadd.f32 %v1446_v52, %v1388_v44  ;;  %v1448_v54 = vpop.f32.mrb[21].mxu1  ;;  %v2461_v44 = vcombine.low %v1751_v41, %v1751_v41 }
 0x31e   : > { %v1449_v55 = vadd.f32 %v1448_v54, %v1390_v45  ;;  %v1450_v56 = vpop.f32.mrb[22].mxu1  ;;  %v1753_v45 = vld [vmem:[%s3041_s9] sm:$0xf]  ;;  %v2432_v54 = vld [vmem:[%s3039_s7 + $0x4] sm:$0x3] }
 0x31f   : > { %v1451_v57 = vpop.f32.mrb[23].mxu1 }
 0x320   : > { %v1506_v58 = vpop.f32.mrb[12].mxu0 }
 0x321   : > { %v1513_v59 = vadd.f32 %v1506_v58, %v1447_v53  ;;  %v1508_v60 = vpop.f32.mrb[13].mxu0 }
 0x322   : > { %v1514_v62 = vadd.f32 %v1508_v60, %v1449_v55  ;;  %v1510_v63 = vpop.f32.mrb[14].mxu0  ;;  %v2431_v60 = vld [vmem:[%s3039_s7 + $0x2] sm:$0x3] }
 0x323   : > { %v1515_v3 = vadd.f32 %v1513_v59, %v1333_v61  ;;  %v1511_v4 = vpop.f32.mrb[15].mxu0  ;;  %v2442_v59 = vld [vmem:[%s3039_s7 + $0x8] sm:$0x3]  ;;  %v2441_v61 = vld [vmem:[%s3039_s7 + $0x6] sm:$0x3] }
 0x324   : > { %v1516_v7 = vadd.f32 %v1514_v62, %v1334_v2  ;;  %v2450_v62 = vld [vmem:[%s3039_s7 + $0xc] sm:$0x3]  ;;  %v2449_v2 = vld [vmem:[%s3039_s7 + $0xa] sm:$0x3] }
 0x33c   : > { %v1690_v1 = vpop.f32.mrb[24].mxu1 }
 0x33d   : > { %v1699_v9 = vsel %vm2791_vm0, %v1690_v1, 0.0  ;;  %v1692_v10 = vpop.f32.mrb[25].mxu1  ;;  %v2455_v1 = vld [vmem:[%s3039_s7 + $0xe] sm:$0x3] }
 0x33e   : > { %v1701_v11 = vadd.f32 %v1699_v9, %v1515_v3  ;;  %v1700_v12 = vsel %vm2795_vm1, %v1692_v10, 0.0  ;;  %v1694_v5 = vpop.f32.mrb[26].mxu1  ;;  %v2458_v10 = vld [vmem:[%s3039_s7 + $0x10] sm:$0x3] }
 0x33f   : > { %v1702_v14 = vadd.f32 %v1700_v12, %v1516_v7  ;;  %v1695_v15 = vpop.f32.mrb[27].mxu1 }
 0x340   : > { %v1709_v18 = vmul.f32 %v1707_v8, %v1701_v11 }
 0x341   : > { %v1710_v19 = vmul.f32 %v1707_v8, %v1702_v14 }
 0x342   : > { %v1717_v21 = vadd.f32 %v1715_v6, %v1709_v18 }
 0x343   : > { %v1718_v22 = vadd.f32 %v1715_v6, %v1710_v19 }
 0x344   : > { %v1719_v23 = vmax.f32 %v1717_v21, 0.0 }
 0x345   : > { %v1720_v24 = vmax.f32 %v1718_v22, 0.0 }
 0x346   : > { %v2555_v29 = vpack.c.bf16 %v1719_v23, %v1719_v23 }
 0x347   : > { %v2470_v26 = vpack.c.bf16 %v1720_v24, %v1719_v23  ;;  %v2928_v17 = vpack.c.bf16 %v1720_v24, %v1720_v24 }
 0x348   : > { %v2933_v33 = vsel %vm1155_vm3, %v2555_v29, 0 }
 0x349   : > { %v1742_v28 = vsel %vm1740_vm5, %v2470_v26, 0  ;;  %2429 = vmatprep.subr.msk.bf16.mxu0 %vm1155_vm3, %v2928_v17  ;;  %v1750_v39 = vsel %vm1748_vm6, %v2470_v26, 0 }
 0x34a   : > { %v2434_v31 = vcombine.high %v1742_v28, %v1742_v28  ;;  %v2433_v32 = vcombine.low %v1742_v28, %v1742_v28  ;;  %1770 = vmatpush1.bf16.msra.mxu0 %v2933_v33  ;;  %v2460_v40 = vcombine.high %v1750_v39, %v1750_v39  ;;  %v2459_v42 = vcombine.low %v1750_v39, %v1750_v39 }
 0x34c   : > { %1845 = vrot.lane.b32.xlu0 %v2434_v31, %s2569_s22  ;;  %1843 = vrot.lane.b32.xlu1 %v2433_v32, %s2569_s22 }
 0x34d   : > { %2430 = vmatmul.mubr.msk.bf16.vlgmr.msra.gmra.mrb[16].mxu0 %vm1151_vm4, %v1754_v34 }
 0x34e   : > { %1892 = vmatprep.mubr.bf16.mxu0 %v2564_v0 }
 0x350   : > { %1964 = vrot.lane.b32.xlu0 %v2555_v29, %s2572_s25  ;;  %1847 = vrot.lane.b32.xlu1 %v2435_v37, %s2569_s22  ;;  %s2468_s22 = sshll.u32 %s3052_s14, 5 }
 0x354   : > { %1968 = vrot.lane.b32.xlu0 %v2443_v38, %s2572_s25  ;;  %1966 = vrot.lane.b32.xlu1 %v2928_v17, %s2572_s25 }
 0x358   : > { %2230 = vrot.lane.b32.xlu0 %v2460_v40, %s2573_s26  ;;  %2228 = vrot.lane.b32.xlu1 %v2459_v42, %s2573_s26 }
 0x35c   : > { %1812 = vperm.xlu0 %2539, %v1752_v43   ;;  %2232 = vrot.lane.b32.xlu1 %v2461_v44, %s2573_s26  ;;  %s3023_s26 = scalar_lea.vmem %s3042_s10, %s2468_s22 }
 0x360   : > { %1819 = vperm.xlu1 %2540, %v1753_v45  }
 0x3be   : > { %v1846_v46 = vpop.permute.xlu0 %1845  ;;  %v1844_v47 = vpop.permute.xlu1 %1843 }
 0x3bf   : > { %v1849_v48 = vsel %vm881_vm7, %v1844_v47, %v1846_v46 }
 0x3c0   : > { %v1855_v52 = vsel %vm1155_vm3, %v1849_v48, 0 }
 0x3c2   : > { %v1965_v49 = vpop.permute.xlu0 %1964  ;;  %v1848_v50 = vpop.permute.xlu1 %1847 }
 0x3c3   : > { %v1850_v51 = vsel %vm881_vm7, %v1846_v46, %v1848_v50 }
 0x3c4   : > { %2436 = vmatprep.subr.msk.bf16.mxu0 %vm1155_vm3, %v1850_v51 }
 0x3c5   : > { %1861 = vmatpush1.bf16.msra.mxu0 %v1855_v52 }
 0x3c6   : > { %v1969_v53 = vpop.permute.xlu0 %1968  ;;  %2438 = vmatprep.subr.msk.bf16.mxu0 %vm1155_vm3, %v2928_v17  ;;  %v1967_v55 = vpop.permute.xlu1 %1966 }
 0x3c7   : > { %v1970_v56 = vsel %vm795_vm10, %v1965_v49, %v1967_v55  ;;  %v1971_v57 = vsel %vm795_vm10, %v1967_v55, %v1969_v53 }
 0x3c8   : > { %v1976_v58 = vsel %vm1155_vm3, %v1970_v56, 0  ;;  %2437 = vmatmul.mubr.msk.bf16.vlgmr.msra.gmra.mrb[20].mxu0 %vm1151_vm4, %v2432_v54  ;;  %2444 = vmatprep.subr.msk.bf16.mxu1 %vm1155_vm3, %v1971_v57 }
 0x3c9   : > { %1905 = vmatpush1.bf16.msra.mxu0 %v2933_v33  ;;  %1982 = vmatpush1.bf16.msra.mxu1 %v1976_v58 }
 0x3ca   : > { %2446 = vmatprep.subr.msk.bf16.mxu1 %vm1155_vm3, %v2928_v17  ;;  %2451 = vmatprep.subr.msk.bf16.mxu0 %vm1155_vm3, %v1850_v51  ;;  %v2229_v63 = vpop.permute.xlu1 %2228  ;;  %v2231_v4 = vpop.permute.xlu0 %2230 }
 0x3cb   : > { %1936 = vmatprep.mubr.bf16.mxu0 %v2564_v0  ;;  %v2234_v8 = vsel %vm1036_vm11, %v2229_v63, %v2231_v4 }
 0x3cc   : > { %2445 = vmatmul.mubr.msk.bf16.vlgmr.msra.gmra.mrb[28].mxu1 %vm1151_vm4, %v2442_v59  ;;  %v2240_v9 = vsel %vm1155_vm3, %v2234_v8, 0 }
 0x3cd   : > { %2026 = vmatpush1.bf16.msra.mxu1 %v2933_v33  ;;  %2057 = vmatprep.mubr.bf16.mxu1 %v2564_v0 }
 0x3ce   : > { %v2233_v3 = vpop.permute.xlu1 %2232 }
 0x3cf   : > { %v2235_v7 = vsel %vm1036_vm11, %v2231_v4, %v2233_v3 }
 0x3d4   : > { %2439 = vmatmul.mubr.msk.bf16.vlgmr.msra.gmra.mrb[20].mxu0 %vm1151_vm4, %v2431_v60 }
 0x3d5   : > { %2086 = vmatpush1.bf16.msra.mxu0 %v1855_v52  ;;  %2117 = vmatprep.mubr.bf16.mxu0 %v2564_v0 }
 0x3d6   : > { %2453 = vmatprep.subr.msk.bf16.mxu0 %vm1155_vm3, %v2928_v17 }
 0x3d8   : > { %2447 = vmatmul.mubr.msk.bf16.vlgmr.msra.gmra.mrb[28].mxu1 %vm1151_vm4, %v2441_v61 }
 0x3db   : > { %v1813_v11 = vpop.permute.xlu0 %1812 }
 0x3dc   : > { %2452 = vmatmul.mubr.msk.bf16.vlgmr.msra.gmra.mrb[24].mxu0 %vm1151_vm4, %v2450_v62 }
 0x3dd   : > { %2130 = vmatpush1.bf16.msra.mxu0 %v2933_v33  ;;  %2161 = vmatprep.mubr.bf16.mxu0 %v2564_v0 }
 0x3de   : > { %2456 = vmatprep.subr.msk.bf16.mxu0 %vm1155_vm3, %v1971_v57 }
 0x3df   : > { %v1820_v14 = vpop.permute.xlu1 %1819 }
 0x3e8   : > { %2454 = vmatmul.mubr.msk.bf16.vlgmr.msra.gmra.mrb[24].mxu0 %vm1151_vm4, %v2449_v2 }
 0x3e9   : > { %2176 = vmatpush1.bf16.msra.mxu0 %v1976_v58  ;;  %2207 = vmatprep.mubr.bf16.mxu0 %v2564_v0 }
 0x3ea   : > { %2462 = vmatprep.subr.msk.bf16.mxu0 %vm1155_vm3, %v2235_v7 }
 0x3f4   : > { %2457 = vmatmul.mubr.msk.bf16.vlgmr.msra.gmra.mrb[24].mxu0 %vm1151_vm4, %v2455_v1 }
 0x3f5   : > { %2246 = vmatpush1.bf16.msra.mxu0 %v2240_v9  ;;  %2277 = vmatprep.mubr.bf16.mxu0 %v2564_v0 }
 0x400   : > { %2463 = vmatmul.mubr.msk.bf16.vlgmr.msra.gmra.mrb[24].mxu0 %vm1151_vm4, %v2458_v10 }
 0x420   : > { %v1803_v12 = vpop.f32.mrb[16].mxu0 }
 0x421   : > { %v1815_v5 = vmul.f32 %v1813_v11, %v1803_v12  ;;  %v1805_v13 = vpop.f32.mrb[17].mxu0 }
 0x422   : > { %v1816_v15 = vmul.f32 %v1813_v11, %v1805_v13  ;;  %v1807_v18 = vpop.f32.mrb[18].mxu0 }
 0x423   : > { %v1822_v6 = vadd.f32 %v1820_v14, %v1815_v5  ;;  %v1808_v19 = vpop.f32.mrb[19].mxu0 }
 0x424   : > { %v1823_v20 = vadd.f32 %v1820_v14, %v1816_v15 }
 0x425   : > { %v1824_v21 = vmax.f32 %v1822_v6, 0.0 }
 0x426   : > { %v1825_v22 = vmax.f32 %v1823_v20, 0.0 }
 0x428   : > { %v1828_v0 = vcombine.low %v1824_v21, %v1825_v22 }
 0x42a   : > { %1830 = vst [vmem:[%s3023_s26] sm:$0xff] %v1828_v0 }
 0x4a7   : > { %v1938_v23 = vpop.f32.mrb[20].mxu0 }
 0x4a8   : > { %v1945_v24 = vmul.f32 %v1938_v23, %v1813_v11  ;;  %v1940_v25 = vpop.f32.mrb[21].mxu0 }
 0x4a9   : > { %v1946_v16 = vmul.f32 %v1940_v25, %v1813_v11  ;;  %v1942_v26 = vpop.f32.mrb[22].mxu0 }
 0x4aa   : > { %v1947_v27 = vadd.f32 %v1945_v24, %v1820_v14  ;;  %v1943_v17 = vpop.f32.mrb[23].mxu0 }
 0x4ab   : > { %v1948_v28 = vadd.f32 %v1946_v16, %v1820_v14  ;;  %v2059_v29 = vpop.f32.mrb[28].mxu1 }
 0x4ac   : > { %v1949_v30 = vmax.f32 %v1947_v27, 0.0  ;;  %v2066_v31 = vmul.f32 %v2059_v29, %v1813_v11  ;;  %v2061_v32 = vpop.f32.mrb[29].mxu1 }
 0x4ad   : > { %v1950_v33 = vmax.f32 %v1948_v28, 0.0  ;;  %v2067_v34 = vmul.f32 %v2061_v32, %v1813_v11  ;;  %v2063_v35 = vpop.f32.mrb[30].mxu1 }
 0x4ae   : > { %v2068_v36 = vadd.f32 %v2066_v31, %v1820_v14  ;;  %v2064_v37 = vpop.f32.mrb[31].mxu1 }
 0x4af   : > { %v1953_v38 = vcombine.low %v1949_v30, %v1950_v33  ;;  %v2069_v39 = vadd.f32 %v2067_v34, %v1820_v14 }
 0x4b0   : > { %v2070_v40 = vmax.f32 %v2068_v36, 0.0 }
 0x4b1   : > { %2440 = vst [vmem:[%s3023_s26 + $0x8] sm:$0xff] %v1953_v38  ;;  %v2071_v41 = vmax.f32 %v2069_v39, 0.0 }
 0x4b3   : > { %v2074_v42 = vcombine.low %v2070_v40, %v2071_v41 }
 0x4b5   : > { %2448 = vst [vmem:[%s3023_s26 + $0x10] sm:$0xff] %v2074_v42 }
 0x4d3   : > { %v2279_v43 = vpop.f32.mrb[24].mxu0 }
 0x4d4   : > { %v2288_v44 = vmul.f32 %v2279_v43, %v1813_v11  ;;  %v2281_v45 = vpop.f32.mrb[25].mxu0 }
 0x4d5   : > { %v2289_v46 = vmul.f32 %v2281_v45, %v1813_v11  ;;  %v2283_v47 = vpop.f32.mrb[26].mxu0 }
 0x4d6   : > { %v2290_v48 = vadd.f32 %v2288_v44, %v1820_v14  ;;  %v2284_v49 = vpop.f32.mrb[27].mxu0 }
 0x4d7   : > { %v2291_v50 = vadd.f32 %v2289_v46, %v1820_v14 }
 0x4d8   : > { %v2292_v51 = vmax.f32 %v2290_v48, 0.0 }
 0x4d9   : > { %v2293_v52 = vmax.f32 %v2291_v50, 0.0 }
 0x4db   : > { %v2296_v53 = vcombine.low %v2292_v51, %v2293_v52 }
 0x4dd   : > { %2464 = vst [vmem:[%s3023_s26 + $0x18] sm:$0xff] %v2296_v53 }
 0x4de PF: > { %s20_s13 = sadd.s32 1, %s2562_s13  }
 0x4df   : > { %p17_p4 = scmp.ge.s32.totalorder %s20_s13, 4  }
 0x4e1   :  { %19 = sbr.rel (!%p17_p4) target bundleno = 1 (0x1), region = 117 }

</bundles_post_ra>
